<compile_context>
chip_gen: v7x
topology: tpu7x:2x2x1
jax: 0.10.0
libtpu: 0.0.40
codegen_flags: <defaults>
</compile_context>

<pallas_src>
import functools

import jax
import jax.numpy as jnp
from jax.experimental import pallas as pl
from jax.experimental.pallas import tpu as pltpu


def _round_up(x, m):
    return ((x + m - 1) // m) * m


# ---------------------------------------------------------------------------
# Pallas kernel: embedding gather + input projection + LSTM recurrence +
# output slicing, all in one invocation (no grid).
# ---------------------------------------------------------------------------
def _encoder_kernel(idx_ref, emb_ref, wih_ref, whh_ref, bias_ref,
                    h_out_ref, c_out_ref, xg_sc, *, batch, hidden):
    """
    idx_ref  : (S*Bp, 1) int32  time-major token ids (row t*Bp+b = src[b, t];
                                padded batch rows hold id == vocab -> zero row)
    emb_ref  : (Vp, Ep)         embedding table, zero padded
    wih_ref  : (Ep, G4p)        W_ih^T, gates packed [i|f|g|o], end-padded
    whh_ref  : (Hc, G4p)        W_hh^T, same column packing, rows H..Hc zero
    bias_ref : (1, G4p)         b_ih + b_hh (f32), packed / end-padded
    h_out_ref, c_out_ref : (1, B, H) final hidden / cell state (unpadded)
    xg_sc    : (S, Bp, G4p)     VMEM scratch: hoisted input projection
    """
    B, H = batch, hidden
    S, Bp, G4p = xg_sc.shape
    Vp = emb_ref.shape[0]
    Hc = whh_ref.shape[0]          # 128-aligned recurrent contracting width

    # ---- Phase 1: fused embedding gather + time-parallel input projection.
    # onehot(token) @ emb == emb[token]; both matmuls run on the MXU over all
    # S*Bp rows at once, so the sequential loop below only does h @ W_hh^T.
    idx = idx_ref[...]                                              # (S*Bp, 1)
    lanes = jax.lax.broadcasted_iota(jnp.int32, (S * Bp, Vp), 1)
    onehot = (lanes == idx).astype(emb_ref.dtype)                   # (S*Bp, Vp)
    x = jnp.dot(onehot, emb_ref[...],
                preferred_element_type=jnp.float32)                 # (S*Bp, Ep)
    xg = jnp.dot(x.astype(wih_ref.dtype), wih_ref[...],
                 preferred_element_type=jnp.float32) + bias_ref[...]
    xg_sc[...] = xg.reshape(S, Bp, G4p)

    # ---- Phase 2: sequential recurrence; h/c carried in vregs.
    whh = whh_ref[...]                         # loaded ONCE, stays resident
    lane_pad = Hc - H
    zpad = (jnp.zeros((Bp, lane_pad), jnp.float32) if lane_pad else None)

    def step(t, carry):
        h, c = carry
        gates = xg_sc[t] + jnp.dot(h.astype(whh.dtype), whh,
                                   preferred_element_type=jnp.float32)
        # PyTorch gate order i, f, g, o packed into 4*H contiguous lanes.
        i_g = jax.nn.sigmoid(gates[:, 0 * H:1 * H])
        f_g = jax.nn.sigmoid(gates[:, 1 * H:2 * H])
        g_g = jnp.tanh(gates[:, 2 * H:3 * H])
        o_g = jax.nn.sigmoid(gates[:, 3 * H:4 * H])
        c = f_g * c + i_g * g_g                                     # (Bp, H)
        h_new = o_g * jnp.tanh(c)                                   # (Bp, H)
        if lane_pad:   # keep the recurrent contracting dim 128-aligned
            h_new = jnp.concatenate([h_new, zpad], axis=1)          # (Bp, Hc)
        return h_new, c

    h = jnp.zeros((Bp, Hc), jnp.float32)
    c = jnp.zeros((Bp, H), jnp.float32)
    if S <= 16:                                # small S: full unroll
        for t in range(S):
            h, c = step(t, (h, c))
    else:                                      # large S: bounded live ranges
        h, c = jax.lax.fori_loop(0, S, step, (h, c))

    # ---- Fused output slicing: write the unpadded (1, B, H) states directly.
    h_out_ref[0] = h[:B, :H]
    c_out_ref[0] = c[:B, :H]


# ---------------------------------------------------------------------------
# One-time parameter preparation (transpose, gate packing, lane alignment).
# ---------------------------------------------------------------------------
def prepare_encoder_params(params, *, param_dtype=jnp.float32, lane=128):
    """param_dtype=jnp.bfloat16 halves MXU-operand/VMEM traffic on v6e/v7x;
    dots keep f32 accumulation and gate math stays f32 (v5e-safe)."""
    V, E = params["embedding"].shape
    H = params["w_hh"].shape[1]
    Vp = _round_up(V, lane)
    Ep = _round_up(E, lane)
    Hc = _round_up(H, lane)           # recurrent contracting width
    G4p = _round_up(4 * H, lane)      # packed gate width (4*H, end-padded)

    emb = jnp.zeros((Vp, Ep), param_dtype).at[:V, :E].set(
        params["embedding"].astype(param_dtype))
    wih_t = jnp.zeros((Ep, G4p), param_dtype).at[:E, :4 * H].set(
        jnp.transpose(params["w_ih"]).astype(param_dtype))
    whh_t = jnp.zeros((Hc, G4p), param_dtype).at[:H, :4 * H].set(
        jnp.transpose(params["w_hh"]).astype(param_dtype))
    bias = jnp.zeros((1, G4p), jnp.float32).at[0, :4 * H].set(
        (params["b_ih"] + params["b_hh"]).astype(jnp.float32))

    return {"embedding": emb, "wih_t": wih_t, "whh_t": whh_t, "bias": bias,
            "vocab": V, "hidden": H, "g4p": G4p}


def encoder_forward(src_index, prep):
    """src_index: (B, S) int token ids. Returns (h_n, c_n), each (1, B, H)."""
    B, S = src_index.shape
    Bp = _round_up(B, 8)
    H = prep["hidden"]
    G4p = prep["g4p"]

    # Only remaining wrapper-side work: tiny int32 index prep (time-major +
    # batch pad).  Padded rows get id == vocab -> all-zero embedding row.
    idx = jnp.transpose(src_index).astype(jnp.int32)                # (S, B)
    idx = jnp.pad(idx, ((0, 0), (0, Bp - B)), constant_values=prep["vocab"])
    idx = idx.reshape(S * Bp, 1)

    kernel = functools.partial(_encoder_kernel, batch=B, hidden=H)
    h_n, c_n = pl.pallas_call(
        kernel,
        out_shape=(jax.ShapeDtypeStruct((1, B, H), jnp.float32),
                   jax.ShapeDtypeStruct((1, B, H), jnp.float32)),
        in_specs=[pl.BlockSpec(memory_space=pltpu.MemorySpace.VMEM)] * 5,
        out_specs=(pl.BlockSpec(memory_space=pltpu.MemorySpace.VMEM),
                   pl.BlockSpec(memory_space=pltpu.MemorySpace.VMEM)),
        scratch_shapes=[pltpu.VMEM((S, Bp, G4p), jnp.float32)],
    )(idx, prep["embedding"], prep["wih_t"], prep["whh_t"], prep["bias"])
    return h_n, c_n


# ---------------------------------------------------------------------------
# Pure-JAX reference (lax.scan) for correctness check.
# ---------------------------------------------------------------------------
def _reference_forward(src_index, params):
    emb = jnp.take(params["embedding"], src_index, axis=0)    # (B, S, E)
    x_tm = jnp.transpose(emb, (1, 0, 2))                      # (S, B, E)
    H = params["w_hh"].shape[1]
    B = src_index.shape[0]
    bias = params["b_ih"] + params["b_hh"]

    def step(carry, x_t):
        h, c = carry
        gates = x_t @ params["w_ih"].T + h @ params["w_hh"].T + bias
        i = jax.nn.sigmoid(gates[:, 0 * H:1 * H])
        f = jax.nn.sigmoid(gates[:, 1 * H:2 * H])
        g = jnp.tanh(gates[:, 2 * H:3 * H])
        o = jax.nn.sigmoid(gates[:, 3 * H:4 * H])
        c = f * c + i * g
        h = o * jnp.tanh(c)
        return (h, c), None

    init = (jnp.zeros((B, H), jnp.float32), jnp.zeros((B, H), jnp.float32))
    (h, c), _ = jax.lax.scan(step, init, x_tm)
    return h[None], c[None]


def make_params(key, vocab, dim_embed, dim_hidden):
    ks = jax.random.split(key, 5)
    bound = 1.0 / jnp.sqrt(dim_hidden)
    return {
        "embedding": jax.random.normal(ks[0], (vocab, dim_embed), jnp.float32),
        "w_ih": jax.random.uniform(ks[1], (4 * dim_hidden, dim_embed),
                                   jnp.float32, -bound, bound),
        "w_hh": jax.random.uniform(ks[2], (4 * dim_hidden, dim_hidden),
                                   jnp.float32, -bound, bound),
        "b_ih": jax.random.uniform(ks[3], (4 * dim_hidden,),
                                   jnp.float32, -bound, bound),
        "b_hh": jax.random.uniform(ks[4], (4 * dim_hidden,),
                                   jnp.float32, -bound, bound),
    }


if __name__ == "__main__":
    B, S = 2, 8
    VOCAB, EMBED, HIDDEN = 50, 32, 32

    key = jax.random.PRNGKey(0)
    pkey, dkey = jax.random.split(key)
    params = make_params(pkey, VOCAB, EMBED, HIDDEN)
    src_index = jax.random.randint(dkey, (B, S), 0, VOCAB, dtype=jnp.int32)

    h_ref, c_ref = _reference_forward(src_index, params)

    # f32 path: exact vs. reference, safe on all TPU generations.
    prep = prepare_encoder_params(params)
    h_n, c_n = encoder_forward(src_index, prep)
    jax.block_until_ready((h_n, c_n))
    assert h_n.shape == (1, B, HIDDEN) and c_n.shape == (1, B, HIDDEN)
    assert jnp.allclose(h_n, h_ref, atol=1e-5)
    assert jnp.allclose(c_n, c_ref, atol=1e-5)

    # bf16 MXU-operand path (v6e/v7x perf win; f32 accumulation + f32 gates).
    prep_bf16 = prepare_encoder_params(params, param_dtype=jnp.bfloat16)
    h_b, c_b = encoder_forward(src_index, prep_bf16)
    jax.block_until_ready((h_b, c_b))
    assert jnp.allclose(h_b, h_ref, atol=5e-2)
    assert jnp.allclose(c_b, c_ref, atol=5e-2)

    print("KERNEL_OK")
</pallas_src>

<mosaic_0001>
module attributes {stable_mosaic.version = 11 : i64} {
  func.func @_encoder_kernel(%arg0: memref<64x1xi32, #tpu.memory_space<vmem>>, %arg1: memref<128x128xf32, #tpu.memory_space<vmem>>, %arg2: memref<128x128xf32, #tpu.memory_space<vmem>>, %arg3: memref<128x128xf32, #tpu.memory_space<vmem>>, %arg4: memref<1x128xf32, #tpu.memory_space<vmem>>, %arg5: memref<1x2x32xf32, #tpu.memory_space<vmem>>, %arg6: memref<1x2x32xf32, #tpu.memory_space<vmem>>, %arg7: memref<8x8x128xf32, #tpu.memory_space<vmem>>) attributes {dimension_semantics = [], scalar_prefetch = 0 : i64, scratch_operands = 1 : i64, tpu.core_type = #tpu.core_type<tc>} {
    %c0 = arith.constant 0 : index
    %c0_0 = arith.constant 0 : index
    %0 = vector.load %arg0[%c0, %c0_0] : memref<64x1xi32, #tpu.memory_space<vmem>>, vector<64x1xi32>
    %1 = tpu.iota {dimensions = array<i32: 1>} : vector<64x128xi32>
    %2 = vector.broadcast %0 : vector<64x1xi32> to vector<64x128xi32>
    %3 = arith.cmpi eq, %1, %2 : vector<64x128xi32>
    %4 = arith.extui %3 : vector<64x128xi1> to vector<64x128xi32>
    %5 = arith.sitofp %4 : vector<64x128xi32> to vector<64x128xf32>
    %c0_1 = arith.constant 0 : index
    %c0_2 = arith.constant 0 : index
    %6 = vector.load %arg1[%c0_1, %c0_2] : memref<128x128xf32, #tpu.memory_space<vmem>>, vector<128x128xf32>
    %cst = arith.constant dense<0.000000e+00> : vector<64x128xf32>
    %7 = tpu.matmul %5, %6, %cst {dimension_numbers = #tpu.dot_dimension_numbers<[1], [0], [0], [1], [0, 0, 1, 1], [], []>} : vector<64x128xf32>, vector<128x128xf32>, vector<64x128xf32> -> vector<64x128xf32>
    %c0_3 = arith.constant 0 : index
    %c0_4 = arith.constant 0 : index
    %8 = vector.load %arg2[%c0_3, %c0_4] : memref<128x128xf32, #tpu.memory_space<vmem>>, vector<128x128xf32>
    %cst_5 = arith.constant dense<0.000000e+00> : vector<64x128xf32>
    %9 = tpu.matmul %7, %8, %cst_5 {dimension_numbers = #tpu.dot_dimension_numbers<[1], [0], [0], [1], [0, 0, 1, 1], [], []>} : vector<64x128xf32>, vector<128x128xf32>, vector<64x128xf32> -> vector<64x128xf32>
    %c0_6 = arith.constant 0 : index
    %c0_7 = arith.constant 0 : index
    %10 = vector.load %arg4[%c0_6, %c0_7] : memref<1x128xf32, #tpu.memory_space<vmem>>, vector<1x128xf32>
    %11 = vector.broadcast %10 : vector<1x128xf32> to vector<64x128xf32>
    %12 = arith.addf %9, %11 : vector<64x128xf32>
    %13 = vector.shape_cast %12 : vector<64x128xf32> to vector<8x8x128xf32>
    %c0_8 = arith.constant 0 : index
    %c0_9 = arith.constant 0 : index
    %c0_10 = arith.constant 0 : index
    %14 = vector.load %arg7[%c0_8, %c0_9, %c0_10] : memref<8x8x128xf32, #tpu.memory_space<vmem>>, vector<8x8x128xf32>
    tpu.vector_store %arg7[%c0_8, %c0_9, %c0_10], %13 {strides = array<i32>} : memref<8x8x128xf32, #tpu.memory_space<vmem>>, vector<8x8x128xf32>,
    %c0_11 = arith.constant 0 : index
    %c0_12 = arith.constant 0 : index
    %15 = vector.load %arg3[%c0_11, %c0_12] : memref<128x128xf32, #tpu.memory_space<vmem>>, vector<128x128xf32>
    %cst_13 = arith.constant 0.000000e+00 : f32
    %16 = vector.broadcast %cst_13 : f32 to vector<8x96xf32>
    %cst_14 = arith.constant 0.000000e+00 : f32
    %17 = vector.broadcast %cst_14 : f32 to vector<8x128xf32>
    %cst_15 = arith.constant 0.000000e+00 : f32
    %18 = vector.broadcast %cst_15 : f32 to vector<8x32xf32>
    %c0_16 = arith.constant 0 : index
    %c0_17 = arith.constant 0 : index
    %c0_18 = arith.constant 0 : index
    %19 = vector.load %arg7[%c0_16, %c0_17, %c0_18] : memref<8x8x128xf32, #tpu.memory_space<vmem>>, vector<1x8x128xf32>
    %20 = vector.shape_cast %19 : vector<1x8x128xf32> to vector<8x128xf32>
    %cst_19 = arith.constant dense<0.000000e+00> : vector<8x128xf32>
    %21 = tpu.matmul %17, %15, %cst_19 {dimension_numbers = #tpu.dot_dimension_numbers<[1], [0], [0], [1], [0, 0, 1, 1], [], []>} : vector<8x128xf32>, vector<128x128xf32>, vector<8x128xf32> -> vector<8x128xf32>
    %22 = arith.addf %20, %21 : vector<8x128xf32>
    %23 = vector.extract_strided_slice %22 {offsets = [0, 0], sizes = [8, 32], strides = [1, 1]} : vector<8x128xf32> to vector<8x32xf32>
    %24 = arith.negf %23 : vector<8x32xf32>
    %25 = math.exp %24 : vector<8x32xf32>
    %cst_20 = arith.constant 1.000000e+00 : f32
    %26 = vector.broadcast %cst_20 : f32 to vector<8x32xf32>
    %27 = arith.addf %26, %25 : vector<8x32xf32>
    %28 = arith.divf %26, %27 : vector<8x32xf32>
    %29 = vector.extract_strided_slice %22 {offsets = [0, 32], sizes = [8, 32], strides = [1, 1]} : vector<8x128xf32> to vector<8x32xf32>
    %30 = arith.negf %29 : vector<8x32xf32>
    %31 = math.exp %30 : vector<8x32xf32>
    %cst_21 = arith.constant 1.000000e+00 : f32
    %32 = vector.broadcast %cst_21 : f32 to vector<8x32xf32>
    %33 = arith.addf %32, %31 : vector<8x32xf32>
    %34 = arith.divf %32, %33 : vector<8x32xf32>
    %35 = vector.extract_strided_slice %22 {offsets = [0, 64], sizes = [8, 32], strides = [1, 1]} : vector<8x128xf32> to vector<8x32xf32>
    %36 = math.tanh %35 : vector<8x32xf32>
    %37 = vector.extract_strided_slice %22 {offsets = [0, 96], sizes = [8, 32], strides = [1, 1]} : vector<8x128xf32> to vector<8x32xf32>
    %38 = arith.negf %37 : vector<8x32xf32>
    %39 = math.exp %38 : vector<8x32xf32>
    %cst_22 = arith.constant 1.000000e+00 : f32
    %40 = vector.broadcast %cst_22 : f32 to vector<8x32xf32>
    %41 = arith.addf %40, %39 : vector<8x32xf32>
    %42 = arith.divf %40, %41 : vector<8x32xf32>
    %43 = arith.mulf %34, %18 : vector<8x32xf32>
    %44 = arith.mulf %28, %36 : vector<8x32xf32>
    %45 = arith.addf %43, %44 : vector<8x32xf32>
    %46 = math.tanh %45 : vector<8x32xf32>
    %47 = arith.mulf %42, %46 : vector<8x32xf32>
    %48 = tpu.concatenate %47, %16 in 1 : vector<8x32xf32>, vector<8x96xf32> -> vector<8x128xf32>
    %c1 = arith.constant 1 : index
    %c0_23 = arith.constant 0 : index
    %c0_24 = arith.constant 0 : index
    %49 = vector.load %arg7[%c1, %c0_23, %c0_24] : memref<8x8x128xf32, #tpu.memory_space<vmem>>, vector<1x8x128xf32>
    %50 = vector.shape_cast %49 : vector<1x8x128xf32> to vector<8x128xf32>
    %cst_25 = arith.constant dense<0.000000e+00> : vector<8x128xf32>
    %51 = tpu.matmul %48, %15, %cst_25 {dimension_numbers = #tpu.dot_dimension_numbers<[1], [0], [0], [1], [0, 0, 1, 1], [], []>} : vector<8x128xf32>, vector<128x128xf32>, vector<8x128xf32> -> vector<8x128xf32>
    %52 = arith.addf %50, %51 : vector<8x128xf32>
    %53 = vector.extract_strided_slice %52 {offsets = [0, 0], sizes = [8, 32], strides = [1, 1]} : vector<8x128xf32> to vector<8x32xf32>
    %54 = arith.negf %53 : vector<8x32xf32>
    %55 = math.exp %54 : vector<8x32xf32>
    %cst_26 = arith.constant 1.000000e+00 : f32
    %56 = vector.broadcast %cst_26 : f32 to vector<8x32xf32>
    %57 = arith.addf %56, %55 : vector<8x32xf32>
    %58 = arith.divf %56, %57 : vector<8x32xf32>
    %59 = vector.extract_strided_slice %52 {offsets = [0, 32], sizes = [8, 32], strides = [1, 1]} : vector<8x128xf32> to vector<8x32xf32>
    %60 = arith.negf %59 : vector<8x32xf32>
    %61 = math.exp %60 : vector<8x32xf32>
    %cst_27 = arith.constant 1.000000e+00 : f32
    %62 = vector.broadcast %cst_27 : f32 to vector<8x32xf32>
    %63 = arith.addf %62, %61 : vector<8x32xf32>
    %64 = arith.divf %62, %63 : vector<8x32xf32>
    %65 = vector.extract_strided_slice %52 {offsets = [0, 64], sizes = [8, 32], strides = [1, 1]} : vector<8x128xf32> to vector<8x32xf32>
    %66 = math.tanh %65 : vector<8x32xf32>
    %67 = vector.extract_strided_slice %52 {offsets = [0, 96], sizes = [8, 32], strides = [1, 1]} : vector<8x128xf32> to vector<8x32xf32>
    %68 = arith.negf %67 : vector<8x32xf32>
    %69 = math.exp %68 : vector<8x32xf32>
    %cst_28 = arith.constant 1.000000e+00 : f32
    %70 = vector.broadcast %cst_28 : f32 to vector<8x32xf32>
    %71 = arith.addf %70, %69 : vector<8x32xf32>
    %72 = arith.divf %70, %71 : vector<8x32xf32>
    %73 = arith.mulf %64, %45 : vector<8x32xf32>
    %74 = arith.mulf %58, %66 : vector<8x32xf32>
    %75 = arith.addf %73, %74 : vector<8x32xf32>
    %76 = math.tanh %75 : vector<8x32xf32>
    %77 = arith.mulf %72, %76 : vector<8x32xf32>
    %78 = tpu.concatenate %77, %16 in 1 : vector<8x32xf32>, vector<8x96xf32> -> vector<8x128xf32>
    %c2 = arith.constant 2 : index
    %c0_29 = arith.constant 0 : index
    %c0_30 = arith.constant 0 : index
    %79 = vector.load %arg7[%c2, %c0_29, %c0_30] : memref<8x8x128xf32, #tpu.memory_space<vmem>>, vector<1x8x128xf32>
    %80 = vector.shape_cast %79 : vector<1x8x128xf32> to vector<8x128xf32>
    %cst_31 = arith.constant dense<0.000000e+00> : vector<8x128xf32>
    %81 = tpu.matmul %78, %15, %cst_31 {dimension_numbers = #tpu.dot_dimension_numbers<[1], [0], [0], [1], [0, 0, 1, 1], [], []>} : vector<8x128xf32>, vector<128x128xf32>, vector<8x128xf32> -> vector<8x128xf32>
    %82 = arith.addf %80, %81 : vector<8x128xf32>
    %83 = vector.extract_strided_slice %82 {offsets = [0, 0], sizes = [8, 32], strides = [1, 1]} : vector<8x128xf32> to vector<8x32xf32>
    %84 = arith.negf %83 : vector<8x32xf32>
    %85 = math.exp %84 : vector<8x32xf32>
    %cst_32 = arith.constant 1.000000e+00 : f32
    %86 = vector.broadcast %cst_32 : f32 to vector<8x32xf32>
    %87 = arith.addf %86, %85 : vector<8x32xf32>
    %88 = arith.divf %86, %87 : vector<8x32xf32>
    %89 = vector.extract_strided_slice %82 {offsets = [0, 32], sizes = [8, 32], strides = [1, 1]} : vector<8x128xf32> to vector<8x32xf32>
    %90 = arith.negf %89 : vector<8x32xf32>
    %91 = math.exp %90 : vector<8x32xf32>
    %cst_33 = arith.constant 1.000000e+00 : f32
    %92 = vector.broadcast %cst_33 : f32 to vector<8x32xf32>
    %93 = arith.addf %92, %91 : vector<8x32xf32>
    %94 = arith.divf %92, %93 : vector<8x32xf32>
    %95 = vector.extract_strided_slice %82 {offsets = [0, 64], sizes = [8, 32], strides = [1, 1]} : vector<8x128xf32> to vector<8x32xf32>
    %96 = math.tanh %95 : vector<8x32xf32>
    %97 = vector.extract_strided_slice %82 {offsets = [0, 96], sizes = [8, 32], strides = [1, 1]} : vector<8x128xf32> to vector<8x32xf32>
    %98 = arith.negf %97 : vector<8x32xf32>
    %99 = math.exp %98 : vector<8x32xf32>
    %cst_34 = arith.constant 1.000000e+00 : f32
    %100 = vector.broadcast %cst_34 : f32 to vector<8x32xf32>
    %101 = arith.addf %100, %99 : vector<8x32xf32>
    %102 = arith.divf %100, %101 : vector<8x32xf32>
    %103 = arith.mulf %94, %75 : vector<8x32xf32>
    %104 = arith.mulf %88, %96 : vector<8x32xf32>
    %105 = arith.addf %103, %104 : vector<8x32xf32>
    %106 = math.tanh %105 : vector<8x32xf32>
    %107 = arith.mulf %102, %106 : vector<8x32xf32>
    %108 = tpu.concatenate %107, %16 in 1 : vector<8x32xf32>, vector<8x96xf32> -> vector<8x128xf32>
    %c3 = arith.constant 3 : index
    %c0_35 = arith.constant 0 : index
    %c0_36 = arith.constant 0 : index
    %109 = vector.load %arg7[%c3, %c0_35, %c0_36] : memref<8x8x128xf32, #tpu.memory_space<vmem>>, vector<1x8x128xf32>
    %110 = vector.shape_cast %109 : vector<1x8x128xf32> to vector<8x128xf32>
    %cst_37 = arith.constant dense<0.000000e+00> : vector<8x128xf32>
    %111 = tpu.matmul %108, %15, %cst_37 {dimension_numbers = #tpu.dot_dimension_numbers<[1], [0], [0], [1], [0, 0, 1, 1], [], []>} : vector<8x128xf32>, vector<128x128xf32>, vector<8x128xf32> -> vector<8x128xf32>
    %112 = arith.addf %110, %111 : vector<8x128xf32>
    %113 = vector.extract_strided_slice %112 {offsets = [0, 0], sizes = [8, 32], strides = [1, 1]} : vector<8x128xf32> to vector<8x32xf32>
    %114 = arith.negf %113 : vector<8x32xf32>
    %115 = math.exp %114 : vector<8x32xf32>
    %cst_38 = arith.constant 1.000000e+00 : f32
    %116 = vector.broadcast %cst_38 : f32 to vector<8x32xf32>
    %117 = arith.addf %116, %115 : vector<8x32xf32>
    %118 = arith.divf %116, %117 : vector<8x32xf32>
    %119 = vector.extract_strided_slice %112 {offsets = [0, 32], sizes = [8, 32], strides = [1, 1]} : vector<8x128xf32> to vector<8x32xf32>
    %120 = arith.negf %119 : vector<8x32xf32>
    %121 = math.exp %120 : vector<8x32xf32>
    %cst_39 = arith.constant 1.000000e+00 : f32
    %122 = vector.broadcast %cst_39 : f32 to vector<8x32xf32>
    %123 = arith.addf %122, %121 : vector<8x32xf32>
    %124 = arith.divf %122, %123 : vector<8x32xf32>
    %125 = vector.extract_strided_slice %112 {offsets = [0, 64], sizes = [8, 32], strides = [1, 1]} : vector<8x128xf32> to vector<8x32xf32>
    %126 = math.tanh %125 : vector<8x32xf32>
    %127 = vector.extract_strided_slice %112 {offsets = [0, 96], sizes = [8, 32], strides = [1, 1]} : vector<8x128xf32> to vector<8x32xf32>
    %128 = arith.negf %127 : vector<8x32xf32>
    %129 = math.exp %128 : vector<8x32xf32>
    %cst_40 = arith.constant 1.000000e+00 : f32
    %130 = vector.broadcast %cst_40 : f32 to vector<8x32xf32>
    %131 = arith.addf %130, %129 : vector<8x32xf32>
    %132 = arith.divf %130, %131 : vector<8x32xf32>
    %133 = arith.mulf %124, %105 : vector<8x32xf32>
    %134 = arith.mulf %118, %126 : vector<8x32xf32>
    %135 = arith.addf %133, %134 : vector<8x32xf32>
    %136 = math.tanh %135 : vector<8x32xf32>
    %137 = arith.mulf %132, %136 : vector<8x32xf32>
    %138 = tpu.concatenate %137, %16 in 1 : vector<8x32xf32>, vector<8x96xf32> -> vector<8x128xf32>
    %c4 = arith.constant 4 : index
    %c0_41 = arith.constant 0 : index
    %c0_42 = arith.constant 0 : index
    %139 = vector.load %arg7[%c4, %c0_41, %c0_42] : memref<8x8x128xf32, #tpu.memory_space<vmem>>, vector<1x8x128xf32>
    %140 = vector.shape_cast %139 : vector<1x8x128xf32> to vector<8x128xf32>
    %cst_43 = arith.constant dense<0.000000e+00> : vector<8x128xf32>
    %141 = tpu.matmul %138, %15, %cst_43 {dimension_numbers = #tpu.dot_dimension_numbers<[1], [0], [0], [1], [0, 0, 1, 1], [], []>} : vector<8x128xf32>, vector<128x128xf32>, vector<8x128xf32> -> vector<8x128xf32>
    %142 = arith.addf %140, %141 : vector<8x128xf32>
    %143 = vector.extract_strided_slice %142 {offsets = [0, 0], sizes = [8, 32], strides = [1, 1]} : vector<8x128xf32> to vector<8x32xf32>
    %144 = arith.negf %143 : vector<8x32xf32>
    %145 = math.exp %144 : vector<8x32xf32>
    %cst_44 = arith.constant 1.000000e+00 : f32
    %146 = vector.broadcast %cst_44 : f32 to vector<8x32xf32>
    %147 = arith.addf %146, %145 : vector<8x32xf32>
    %148 = arith.divf %146, %147 : vector<8x32xf32>
    %149 = vector.extract_strided_slice %142 {offsets = [0, 32], sizes = [8, 32], strides = [1, 1]} : vector<8x128xf32> to vector<8x32xf32>
    %150 = arith.negf %149 : vector<8x32xf32>
    %151 = math.exp %150 : vector<8x32xf32>
    %cst_45 = arith.constant 1.000000e+00 : f32
    %152 = vector.broadcast %cst_45 : f32 to vector<8x32xf32>
    %153 = arith.addf %152, %151 : vector<8x32xf32>
    %154 = arith.divf %152, %153 : vector<8x32xf32>
    %155 = vector.extract_strided_slice %142 {offsets = [0, 64], sizes = [8, 32], strides = [1, 1]} : vector<8x128xf32> to vector<8x32xf32>
    %156 = math.tanh %155 : vector<8x32xf32>
    %157 = vector.extract_strided_slice %142 {offsets = [0, 96], sizes = [8, 32], strides = [1, 1]} : vector<8x128xf32> to vector<8x32xf32>
    %158 = arith.negf %157 : vector<8x32xf32>
    %159 = math.exp %158 : vector<8x32xf32>
    %cst_46 = arith.constant 1.000000e+00 : f32
    %160 = vector.broadcast %cst_46 : f32 to vector<8x32xf32>
    %161 = arith.addf %160, %159 : vector<8x32xf32>
    %162 = arith.divf %160, %161 : vector<8x32xf32>
    %163 = arith.mulf %154, %135 : vector<8x32xf32>
    %164 = arith.mulf %148, %156 : vector<8x32xf32>
    %165 = arith.addf %163, %164 : vector<8x32xf32>
    %166 = math.tanh %165 : vector<8x32xf32>
    %167 = arith.mulf %162, %166 : vector<8x32xf32>
    %168 = tpu.concatenate %167, %16 in 1 : vector<8x32xf32>, vector<8x96xf32> -> vector<8x128xf32>
    %c5 = arith.constant 5 : index
    %c0_47 = arith.constant 0 : index
    %c0_48 = arith.constant 0 : index
    %169 = vector.load %arg7[%c5, %c0_47, %c0_48] : memref<8x8x128xf32, #tpu.memory_space<vmem>>, vector<1x8x128xf32>
    %170 = vector.shape_cast %169 : vector<1x8x128xf32> to vector<8x128xf32>
    %cst_49 = arith.constant dense<0.000000e+00> : vector<8x128xf32>
    %171 = tpu.matmul %168, %15, %cst_49 {dimension_numbers = #tpu.dot_dimension_numbers<[1], [0], [0], [1], [0, 0, 1, 1], [], []>} : vector<8x128xf32>, vector<128x128xf32>, vector<8x128xf32> -> vector<8x128xf32>
    %172 = arith.addf %170, %171 : vector<8x128xf32>
    %173 = vector.extract_strided_slice %172 {offsets = [0, 0], sizes = [8, 32], strides = [1, 1]} : vector<8x128xf32> to vector<8x32xf32>
    %174 = arith.negf %173 : vector<8x32xf32>
    %175 = math.exp %174 : vector<8x32xf32>
    %cst_50 = arith.constant 1.000000e+00 : f32
    %176 = vector.broadcast %cst_50 : f32 to vector<8x32xf32>
    %177 = arith.addf %176, %175 : vector<8x32xf32>
    %178 = arith.divf %176, %177 : vector<8x32xf32>
    %179 = vector.extract_strided_slice %172 {offsets = [0, 32], sizes = [8, 32], strides = [1, 1]} : vector<8x128xf32> to vector<8x32xf32>
    %180 = arith.negf %179 : vector<8x32xf32>
    %181 = math.exp %180 : vector<8x32xf32>
    %cst_51 = arith.constant 1.000000e+00 : f32
    %182 = vector.broadcast %cst_51 : f32 to vector<8x32xf32>
    %183 = arith.addf %182, %181 : vector<8x32xf32>
    %184 = arith.divf %182, %183 : vector<8x32xf32>
    %185 = vector.extract_strided_slice %172 {offsets = [0, 64], sizes = [8, 32], strides = [1, 1]} : vector<8x128xf32> to vector<8x32xf32>
    %186 = math.tanh %185 : vector<8x32xf32>
    %187 = vector.extract_strided_slice %172 {offsets = [0, 96], sizes = [8, 32], strides = [1, 1]} : vector<8x128xf32> to vector<8x32xf32>
    %188 = arith.negf %187 : vector<8x32xf32>
    %189 = math.exp %188 : vector<8x32xf32>
    %cst_52 = arith.constant 1.000000e+00 : f32
    %190 = vector.broadcast %cst_52 : f32 to vector<8x32xf32>
    %191 = arith.addf %190, %189 : vector<8x32xf32>
    %192 = arith.divf %190, %191 : vector<8x32xf32>
    %193 = arith.mulf %184, %165 : vector<8x32xf32>
    %194 = arith.mulf %178, %186 : vector<8x32xf32>
    %195 = arith.addf %193, %194 : vector<8x32xf32>
    %196 = math.tanh %195 : vector<8x32xf32>
    %197 = arith.mulf %192, %196 : vector<8x32xf32>
    %198 = tpu.concatenate %197, %16 in 1 : vector<8x32xf32>, vector<8x96xf32> -> vector<8x128xf32>
    %c6 = arith.constant 6 : index
    %c0_53 = arith.constant 0 : index
    %c0_54 = arith.constant 0 : index
    %199 = vector.load %arg7[%c6, %c0_53, %c0_54] : memref<8x8x128xf32, #tpu.memory_space<vmem>>, vector<1x8x128xf32>
    %200 = vector.shape_cast %199 : vector<1x8x128xf32> to vector<8x128xf32>
    %cst_55 = arith.constant dense<0.000000e+00> : vector<8x128xf32>
    %201 = tpu.matmul %198, %15, %cst_55 {dimension_numbers = #tpu.dot_dimension_numbers<[1], [0], [0], [1], [0, 0, 1, 1], [], []>} : vector<8x128xf32>, vector<128x128xf32>, vector<8x128xf32> -> vector<8x128xf32>
    %202 = arith.addf %200, %201 : vector<8x128xf32>
    %203 = vector.extract_strided_slice %202 {offsets = [0, 0], sizes = [8, 32], strides = [1, 1]} : vector<8x128xf32> to vector<8x32xf32>
    %204 = arith.negf %203 : vector<8x32xf32>
    %205 = math.exp %204 : vector<8x32xf32>
    %cst_56 = arith.constant 1.000000e+00 : f32
    %206 = vector.broadcast %cst_56 : f32 to vector<8x32xf32>
    %207 = arith.addf %206, %205 : vector<8x32xf32>
    %208 = arith.divf %206, %207 : vector<8x32xf32>
    %209 = vector.extract_strided_slice %202 {offsets = [0, 32], sizes = [8, 32], strides = [1, 1]} : vector<8x128xf32> to vector<8x32xf32>
    %210 = arith.negf %209 : vector<8x32xf32>
    %211 = math.exp %210 : vector<8x32xf32>
    %cst_57 = arith.constant 1.000000e+00 : f32
    %212 = vector.broadcast %cst_57 : f32 to vector<8x32xf32>
    %213 = arith.addf %212, %211 : vector<8x32xf32>
    %214 = arith.divf %212, %213 : vector<8x32xf32>
    %215 = vector.extract_strided_slice %202 {offsets = [0, 64], sizes = [8, 32], strides = [1, 1]} : vector<8x128xf32> to vector<8x32xf32>
    %216 = math.tanh %215 : vector<8x32xf32>
    %217 = vector.extract_strided_slice %202 {offsets = [0, 96], sizes = [8, 32], strides = [1, 1]} : vector<8x128xf32> to vector<8x32xf32>
    %218 = arith.negf %217 : vector<8x32xf32>
    %219 = math.exp %218 : vector<8x32xf32>
    %cst_58 = arith.constant 1.000000e+00 : f32
    %220 = vector.broadcast %cst_58 : f32 to vector<8x32xf32>
    %221 = arith.addf %220, %219 : vector<8x32xf32>
    %222 = arith.divf %220, %221 : vector<8x32xf32>
    %223 = arith.mulf %214, %195 : vector<8x32xf32>
    %224 = arith.mulf %208, %216 : vector<8x32xf32>
    %225 = arith.addf %223, %224 : vector<8x32xf32>
    %226 = math.tanh %225 : vector<8x32xf32>
    %227 = arith.mulf %222, %226 : vector<8x32xf32>
    %228 = tpu.concatenate %227, %16 in 1 : vector<8x32xf32>, vector<8x96xf32> -> vector<8x128xf32>
    %c7 = arith.constant 7 : index
    %c0_59 = arith.constant 0 : index
    %c0_60 = arith.constant 0 : index
    %229 = vector.load %arg7[%c7, %c0_59, %c0_60] : memref<8x8x128xf32, #tpu.memory_space<vmem>>, vector<1x8x128xf32>
    %230 = vector.shape_cast %229 : vector<1x8x128xf32> to vector<8x128xf32>
    %cst_61 = arith.constant dense<0.000000e+00> : vector<8x128xf32>
    %231 = tpu.matmul %228, %15, %cst_61 {dimension_numbers = #tpu.dot_dimension_numbers<[1], [0], [0], [1], [0, 0, 1, 1], [], []>} : vector<8x128xf32>, vector<128x128xf32>, vector<8x128xf32> -> vector<8x128xf32>
    %232 = arith.addf %230, %231 : vector<8x128xf32>
    %233 = vector.extract_strided_slice %232 {offsets = [0, 0], sizes = [8, 32], strides = [1, 1]} : vector<8x128xf32> to vector<8x32xf32>
    %234 = arith.negf %233 : vector<8x32xf32>
    %235 = math.exp %234 : vector<8x32xf32>
    %cst_62 = arith.constant 1.000000e+00 : f32
    %236 = vector.broadcast %cst_62 : f32 to vector<8x32xf32>
    %237 = arith.addf %236, %235 : vector<8x32xf32>
    %238 = arith.divf %236, %237 : vector<8x32xf32>
    %239 = vector.extract_strided_slice %232 {offsets = [0, 32], sizes = [8, 32], strides = [1, 1]} : vector<8x128xf32> to vector<8x32xf32>
    %240 = arith.negf %239 : vector<8x32xf32>
    %241 = math.exp %240 : vector<8x32xf32>
    %cst_63 = arith.constant 1.000000e+00 : f32
    %242 = vector.broadcast %cst_63 : f32 to vector<8x32xf32>
    %243 = arith.addf %242, %241 : vector<8x32xf32>
    %244 = arith.divf %242, %243 : vector<8x32xf32>
    %245 = vector.extract_strided_slice %232 {offsets = [0, 64], sizes = [8, 32], strides = [1, 1]} : vector<8x128xf32> to vector<8x32xf32>
    %246 = math.tanh %245 : vector<8x32xf32>
    %247 = vector.extract_strided_slice %232 {offsets = [0, 96], sizes = [8, 32], strides = [1, 1]} : vector<8x128xf32> to vector<8x32xf32>
    %248 = arith.negf %247 : vector<8x32xf32>
    %249 = math.exp %248 : vector<8x32xf32>
    %cst_64 = arith.constant 1.000000e+00 : f32
    %250 = vector.broadcast %cst_64 : f32 to vector<8x32xf32>
    %251 = arith.addf %250, %249 : vector<8x32xf32>
    %252 = arith.divf %250, %251 : vector<8x32xf32>
    %253 = arith.mulf %244, %225 : vector<8x32xf32>
    %254 = arith.mulf %238, %246 : vector<8x32xf32>
    %255 = arith.addf %253, %254 : vector<8x32xf32>
    %256 = math.tanh %255 : vector<8x32xf32>
    %257 = arith.mulf %252, %256 : vector<8x32xf32>
    %258 = tpu.concatenate %257, %16 in 1 : vector<8x32xf32>, vector<8x96xf32> -> vector<8x128xf32>
    %259 = vector.extract_strided_slice %258 {offsets = [0, 0], sizes = [2, 32], strides = [1, 1]} : vector<8x128xf32> to vector<2x32xf32>
    %c0_65 = arith.constant 0 : index
    %c0_66 = arith.constant 0 : index
    %c0_67 = arith.constant 0 : index
    %260 = vector.load %arg5[%c0_65, %c0_66, %c0_67] : memref<1x2x32xf32, #tpu.memory_space<vmem>>, vector<1x2x32xf32>
    %261 = vector.shape_cast %260 : vector<1x2x32xf32> to vector<2x32xf32>
    %262 = vector.shape_cast %259 : vector<2x32xf32> to vector<1x2x32xf32>
    tpu.vector_store %arg5[%c0_65, %c0_66, %c0_67], %262 {strides = array<i32>} : memref<1x2x32xf32, #tpu.memory_space<vmem>>, vector<1x2x32xf32>,
    %263 = vector.extract_strided_slice %255 {offsets = [0, 0], sizes = [2, 32], strides = [1, 1]} : vector<8x32xf32> to vector<2x32xf32>
    %c0_68 = arith.constant 0 : index
    %c0_69 = arith.constant 0 : index
    %c0_70 = arith.constant 0 : index
    %264 = vector.load %arg6[%c0_68, %c0_69, %c0_70] : memref<1x2x32xf32, #tpu.memory_space<vmem>>, vector<1x2x32xf32>
    %265 = vector.shape_cast %264 : vector<1x2x32xf32> to vector<2x32xf32>
    %266 = vector.shape_cast %263 : vector<2x32xf32> to vector<1x2x32xf32>
    tpu.vector_store %arg6[%c0_68, %c0_69, %c0_70], %266 {strides = array<i32>} : memref<1x2x32xf32, #tpu.memory_space<vmem>>, vector<1x2x32xf32>,
    return
  }
}

</mosaic_0001>

<bundles_post_ra>
// kernel: tpu_custom_call.1
= control target key start
LH: loop header
LB: loop body
LE: loop exit
PB: predicated region body
PF: predicated region fallthrough
CT: control target
= control target key end

     0   :  { %12 = vsyncpa [#allocation4], 0  ;;  %s2662_s0 = inlined_call_operand.vmem [shape: s32[64,1], index: 0, kind: input, shape index: {}]   ;;  %s2663_s1 = inlined_call_operand.hbm [shape: f32[128,128], index: 1, kind: input, shape index: {}]   ;;  %s2664_s2 = inlined_call_operand.hbm [shape: f32[128,128], index: 2, kind: input, shape index: {}]   ;;  %s2665_s3 = inlined_call_operand.hbm [shape: f32[128,128], index: 3, kind: input, shape index: {}]   ;;  %s2666_s4 = inlined_call_operand.vmem [shape: f32[1,128], index: 4, kind: input, shape index: {}]   ;;  %s2667_s5 = inlined_call_operand.hbm [shape: f32[1,2,32], index: 5, kind: output, shape index: {0}]   ;;  %s2668_s6 = inlined_call_operand.hbm [shape: f32[1,2,32], index: 6, kind: output, shape index: {1}]  }
   0x1   :  { %13 = vsyncpa [#allocation7], 0 }
   0x2   :  { %14 = vsyncpa [#allocation5], 0 }
   0x3   :  { %15 = vsyncpa [#allocation11], 0  ;;  %s2288_s21 = smov [#allocation6]   ;;  %s2289_s23 = smov [#allocation3]  }
   0x4   :  { %s35_s22 = sshll.u32 %s2288_s21, 4  ;;  %s23_s24 = sshll.u32 %s2289_s23, 4  ;;  %s36_s22 = int_to_ptr.vmem [resolvable:$true] %s35_s22  ;;  %s2338_s24 = int_to_ptr.vmem [resolvable:$true] %s23_s24 }
   0x5   :  { %s2170_s27 = scalar_lea.hbm %s2664_s2, 2048 }
   0x6   :  { %p2171_p0 = scmp.ne.s32.totalorder %s2664_s2, %s2170_s27  ;;  %p2174_p1 = scmp.lt.u32.totalorder %s2170_s27, %s2664_s2 }
   0x8   :  { %p2176_p2 = pnand %p2174_p1, %p2171_p0 }
   0xa   :  { %2179 = shalt.err (!%p2176_p2)
}
   0xb   :  { %s2180_s8 = scalar_lea.vmem %s36_s22, 2048  ;;  %p2185_p4 = scmp.lt.s32.totalorder %s36_s22, %s36_s22 }
   0xc   :  { %p2181_p3 = scmp.ne.s32.totalorder %s36_s22, %s2180_s8  ;;  %p2186_p5 = scmp.lt.s32.totalorder %s2180_s8, %s2180_s8 }
   0xe   :  { %p2187_p6 = por %p2186_p5, %p2185_p4 }
  0x10   :  { %p2188_p7 = pnand %p2187_p6, %p2181_p3 }
  0x12   :  { %2191 = shalt.err (!%p2188_p7)
}
  0x13   :  { %s2290_s9 = smov 128   ;;  %s2291_s10 = smov 8  }
  0x14   :  { %41 = dma.hbm_to_vmem [thread:$0]  %s2664_s2, 2048, %s36_s22, [#allocation7], %s2290_s9, %s2290_s9, %s2291_s10  }
  0x15   :  { %s2192_s15 = scalar_lea.hbm %s2663_s1, 2048 }
  0x16   :  { %p2193_p8 = scmp.ne.s32.totalorder %s2663_s1, %s2192_s15  ;;  %p2196_p9 = scmp.lt.u32.totalorder %s2192_s15, %s2663_s1 }
  0x18   :  { %p2198_p10 = pnand %p2196_p9, %p2193_p8 }
  0x1a   :  { %2201 = shalt.err (!%p2198_p10)
}
  0x1b   :  { %s2202_s20 = scalar_lea.vmem %s2338_s24, 2048  ;;  %p2207_p12 = scmp.lt.s32.totalorder %s2338_s24, %s2338_s24 }
  0x1c   :  { %p2203_p11 = scmp.ne.s32.totalorder %s2338_s24, %s2202_s20  ;;  %p2208_p13 = scmp.lt.s32.totalorder %s2202_s20, %s2202_s20 }
  0x1e   :  { %p2209_p0 = por %p2208_p13, %p2207_p12 }
  0x20   :  { %p2210_p1 = pnand %p2209_p0, %p2203_p11 }
  0x22   :  { %2213 = shalt.err (!%p2210_p1)
}
  0x23   :  { %29 = dma.hbm_to_vmem [thread:$0]  %s2663_s1, 2048, %s2338_s24, [#allocation4], %s2290_s9, %s2290_s9, %s2291_s10  }
  0x24   :  { %s2292_s22 = smov [#allocation8]   ;;  %s2214_s27 = scalar_lea.hbm %s2665_s3, 2048 }
  0x25   :  { %s47_s23 = sshll.u32 %s2292_s22, 4  ;;  %p2215_p2 = scmp.ne.s32.totalorder %s2665_s3, %s2214_s27  ;;  %s48_s23 = int_to_ptr.vmem [resolvable:$true] %s47_s23 }
  0x26   :  { %p2218_p3 = scmp.lt.u32.totalorder %s2214_s27, %s2665_s3 }
  0x28   :  { %p2220_p4 = pnand %p2218_p3, %p2215_p2 }
  0x2a   :  { %2223 = shalt.err (!%p2220_p4)
}
  0x2b   :  { %s2224_s8 = scalar_lea.vmem %s48_s23, 2048  ;;  %p2229_p6 = scmp.lt.s32.totalorder %s48_s23, %s48_s23 }
  0x2c   :  { %p2225_p5 = scmp.ne.s32.totalorder %s48_s23, %s2224_s8  ;;  %p2230_p7 = scmp.lt.s32.totalorder %s2224_s8, %s2224_s8 }
  0x2e   :  { %p2231_p8 = por %p2230_p7, %p2229_p6 }
  0x30   :  { %p2232_p9 = pnand %p2231_p8, %p2225_p5 }
  0x32   :  { %2235 = shalt.err (!%p2232_p9)
}
  0x33   :  { %53 = dma.hbm_to_vmem [thread:$0]  %s2665_s3, 2048, %s48_s23, [#allocation7], %s2290_s9, %s2290_s9, %s2291_s10  }
  0x34   :  { %2280 = dma.done.wait [#allocation4], 2048  }
  0x35   :  { %2281 = vsyncadd [#allocation4], 4294965248 }
  0x36   :  { %2282 = dma.done.wait [#allocation7], 4096  }
  0x37   :  { %2283 = vsyncadd [#allocation7], 4294963200  ;;  %v2293_v0 = vmov 0   ;;  %v65_v1 = vld [vmem:[%s2662_s0] sm:$0xff]  ;;  %v67_v2 = vld [vmem:[%s2662_s0 + $0x10] sm:$0xff]  ;;  %v2294_v53 = vmov 0.0|0.0   ;;  %v73_v58 = vlaneseq }
  0x38   :  { %2104 = vset.pattern.permute.xlu0 %v2293_v0  ;;  %2105 = vset.pattern.permute.xlu1 %v2293_v0  ;;  %v66_v3 = vld [vmem:[%s2662_s0 + $0x8] sm:$0xff]  ;;  %v68_v4 = vld [vmem:[%s2662_s0 + $0x18] sm:$0xff]  ;;  %v123_v5 = vld [vmem:[#allocation3] sm:$0xff]  ;;  %v2295_v0 = vmov 1.0   ;;  %vm2296_vm8 = vmmov 0   ;;  %s2299_s25 = smov 32  }
  0x39   :  { %76 = vperm.xlu0 %2104, %v65_v1   ;;  %82 = vperm.xlu1 %2105, %v67_v2   ;;  %v124_v6 = vld [vmem:[#allocation3 + $0x8] sm:$0xff]  ;;  %v125_v8 = vld [vmem:[#allocation3 + $0x10] sm:$0xff]  ;;  %v126_v9 = vld [vmem:[#allocation3 + $0x18] sm:$0xff]  ;;  %v74_v59 = vand.u32 127, %v73_v58  ;;  %vm496_vm9 = vcmask 261120   ;;  %s2300_s26 = smov 96  }
  0x3a   :  { %v1833_v7 = vpack.c.bf16 %v124_v6, %v123_v5  ;;  %v1837_v10 = vpack.c.bf16 %v126_v9, %v125_v8  ;;  %v127_v11 = vld [vmem:[#allocation3 + $0x20] sm:$0xff]  ;;  %v128_v12 = vld [vmem:[#allocation3 + $0x28] sm:$0xff]  ;;  %v129_v16 = vld [vmem:[#allocation3 + $0x30] sm:$0xff]  ;;  %s2301_s27 = smov [#allocation10]   ;;  %vm1212_vm10 = vcmask 254976  }
  0x3b   :  { %v69_v13 = vld [vmem:[%s2662_s0 + $0x20] sm:$0xff]  ;;  %v70_v14 = vld [vmem:[%s2662_s0 + $0x28] sm:$0xff]  ;;  %v1841_v15 = vpack.c.bf16 %v128_v12, %v127_v11  ;;  %v130_v17 = vld [vmem:[#allocation3 + $0x38] sm:$0xff]  ;;  %s1235_s28 = sshll.u32 %s2301_s27, 4  ;;  %s1236_s28 = int_to_ptr.vmem [resolvable:$true] %s1235_s28 }
  0x3c   :  { %1834 = vmatprep.subr.bf16.mxu0 %v1833_v7  ;;  %v71_v18 = vld [vmem:[%s2662_s0 + $0x30] sm:$0xff]  ;;  %v1845_v19 = vpack.c.bf16 %v130_v17, %v129_v16  ;;  %v131_v20 = vld [vmem:[#allocation3 + $0x40] sm:$0xff]  ;;  %v132_v21 = vld [vmem:[#allocation3 + $0x48] sm:$0xff]  ;;  %s2236_s29 = scalar_lea.vmem %s1236_s28, 32  ;;  %p2241_p11 = scmp.lt.s32.totalorder %s1236_s28, %s1236_s28 }
  0x3d   :  { %79 = vperm.xlu0 %2104, %v66_v3   ;;  %85 = vperm.xlu1 %2105, %v68_v4   ;;  %v72_v22 = vld [vmem:[%s2662_s0 + $0x38] sm:$0xff]  ;;  %v244_v23 = vld [vmem:[#allocation6] sm:$0xff]  ;;  %v245_v24 = vld [vmem:[#allocation6 + $0x8] sm:$0xff]  ;;  %v1849_v25 = vpack.c.bf16 %v132_v21, %v131_v20  ;;  %p2237_p10 = scmp.ne.s32.totalorder %s1236_s28, %s2236_s29  ;;  %p2242_p12 = scmp.lt.s32.totalorder %s2236_s29, %s2236_s29 }
  0x3e   :  { %1836 = vmatpush3.bf16.msra.mxu0 %v1833_v7  ;;  %v1865_v26 = vpack.c.bf16 %v245_v24, %v244_v23  ;;  %v246_v27 = vld [vmem:[#allocation6 + $0x10] sm:$0xff]  ;;  %v134_v29 = vld [vmem:[#allocation3 + $0x58] sm:$0xff]  ;;  %v248_v32 = vld [vmem:[#allocation6 + $0x20] sm:$0xff] }
  0x3f   :  { %1838 = vmatprep.subr.bf16.mxu0 %v1837_v10  ;;  %v133_v28 = vld [vmem:[#allocation3 + $0x50] sm:$0xff]  ;;  %v247_v30 = vld [vmem:[#allocation6 + $0x18] sm:$0xff]  ;;  %v249_v33 = vld [vmem:[#allocation6 + $0x28] sm:$0xff]  ;;  %p2243_p13 = por %p2242_p12, %p2241_p11 }
  0x40   :  { %1866 = vmatprep.subr.bf16.mxu1 %v1865_v26  ;;  %v1869_v31 = vpack.c.bf16 %v247_v30, %v246_v27  ;;  %v1853_v34 = vpack.c.bf16 %v134_v29, %v133_v28  ;;  %v135_v35 = vld [vmem:[#allocation3 + $0x60] sm:$0xff]  ;;  %v1873_v36 = vpack.c.bf16 %v249_v33, %v248_v32  ;;  %v136_v37 = vld [vmem:[#allocation3 + $0x68] sm:$0xff]  ;;  %v250_v38 = vld [vmem:[#allocation6 + $0x30] sm:$0xff]  ;;  %v2297_v29 = vmov 0.0  }
  0x41   :  { %88 = vperm.xlu0 %2104, %v69_v13   ;;  %91 = vperm.xlu1 %2105, %v70_v14   ;;  %v251_v39 = vld [vmem:[#allocation6 + $0x38] sm:$0xff]  ;;  %v1857_v40 = vpack.c.bf16 %v136_v37, %v135_v35  ;;  %v137_v41 = vld [vmem:[#allocation3 + $0x70] sm:$0xff]  ;;  %v252_v44 = vld [vmem:[#allocation6 + $0x40] sm:$0xff]  ;;  %p2244_p0 = pnand %p2243_p13, %p2237_p10 }
  0x42   :  { %1840 = vmatpush3.bf16.msra.mxu0 %v1837_v10  ;;  %1868 = vmatpush3.bf16.msra.mxu1 %v1865_v26  ;;  %v1877_v42 = vpack.c.bf16 %v251_v39, %v250_v38  ;;  %v138_v43 = vld [vmem:[#allocation3 + $0x78] sm:$0xff]  ;;  %v253_v45 = vld [vmem:[#allocation6 + $0x48] sm:$0xff]  ;;  %v254_v48 = vld [vmem:[#allocation6 + $0x50] sm:$0xff] }
  0x43   :  { %1842 = vmatprep.subr.bf16.mxu0 %v1841_v15  ;;  %1870 = vmatprep.subr.bf16.mxu1 %v1869_v31  ;;  %v1861_v46 = vpack.c.bf16 %v138_v43, %v137_v41  ;;  %v1881_v47 = vpack.c.bf16 %v253_v45, %v252_v44  ;;  %v255_v49 = vld [vmem:[#allocation6 + $0x58] sm:$0xff]  ;;  %v256_v51 = vld [vmem:[#allocation6 + $0x60] sm:$0xff]  ;;  %v257_v52 = vld [vmem:[#allocation6 + $0x68] sm:$0xff] }
  0x44   :  { %v1885_v50 = vpack.c.bf16 %v255_v49, %v254_v48  ;;  %v1889_v54 = vpack.c.bf16 %v257_v52, %v256_v51  ;;  %v258_v55 = vld [vmem:[#allocation6 + $0x70] sm:$0xff]  ;;  %v259_v56 = vld [vmem:[#allocation6 + $0x78] sm:$0xff]  ;;  %v380_v62 = vld [vmem:[#allocation8] sm:$0xff] }
  0x45   :  { %94 = vperm.xlu0 %2104, %v71_v18   ;;  %97 = vperm.xlu1 %2105, %v72_v22   ;;  %v1893_v57 = vpack.c.bf16 %v259_v56, %v258_v55  ;;  %v381_v63 = vld [vmem:[#allocation8 + $0x8] sm:$0xff]  ;;  %v382_v4 = vld [vmem:[#allocation8 + $0x10] sm:$0xff]  ;;  %v383_v5 = vld [vmem:[#allocation8 + $0x18] sm:$0xff] }
  0x46   :  { %1844 = vmatpush3.bf16.msra.mxu0 %v1841_v15  ;;  %1872 = vmatpush3.bf16.msra.mxu1 %v1869_v31  ;;  %v2416_v1 = vpack.c.bf16 %v381_v63, %v380_v62  ;;  %v2419_v6 = vpack.c.bf16 %v383_v5, %v382_v4  ;;  %v384_v9 = vld [vmem:[#allocation8 + $0x20] sm:$0xff]  ;;  %v385_v10 = vld [vmem:[#allocation8 + $0x28] sm:$0xff]  ;;  %v386_v13 = vld [vmem:[#allocation8 + $0x30] sm:$0xff] }
  0x47   :  { %1846 = vmatprep.subr.bf16.mxu0 %v1845_v19  ;;  %1874 = vmatprep.subr.bf16.mxu1 %v1873_v36  ;;  %v2423_v11 = vpack.c.bf16 %v385_v10, %v384_v9  ;;  %v387_v14 = vld [vmem:[#allocation8 + $0x38] sm:$0xff]  ;;  %v388_v17 = vld [vmem:[#allocation8 + $0x40] sm:$0xff]  ;;  %v389_v18 = vld [vmem:[#allocation8 + $0x48] sm:$0xff] }
  0x48   :  { %v2427_v16 = vpack.c.bf16 %v387_v14, %v386_v13  ;;  %v390_v20 = vld [vmem:[#allocation8 + $0x50] sm:$0xff]  ;;  %v391_v21 = vld [vmem:[#allocation8 + $0x58] sm:$0xff]  ;;  %v392_v23 = vld [vmem:[#allocation8 + $0x60] sm:$0xff] }
  0x49   :  { %v2435_v22 = vpack.c.bf16 %v391_v21, %v390_v20  ;;  %v393_v24 = vld [vmem:[#allocation8 + $0x68] sm:$0xff]  ;;  %v394_v26 = vld [vmem:[#allocation8 + $0x70] sm:$0xff]  ;;  %v395_v27 = vld [vmem:[#allocation8 + $0x78] sm:$0xff] }
  0x4a   :  { %1848 = vmatpush3.bf16.msra.mxu0 %v1845_v19  ;;  %1876 = vmatpush3.bf16.msra.mxu1 %v1873_v36  ;;  %v2431_v19 = vpack.c.bf16 %v389_v18, %v388_v17  ;;  %v2444_v28 = vpack.c.bf16 %v395_v27, %v394_v26 }
  0x4b   :  { %1850 = vmatprep.subr.bf16.mxu0 %v1849_v25  ;;  %1878 = vmatprep.subr.bf16.mxu1 %v1877_v42 }
  0x4e   :  { %1852 = vmatpush3.bf16.msra.mxu0 %v1849_v25  ;;  %1880 = vmatpush3.bf16.msra.mxu1 %v1877_v42  ;;  %v2439_v25 = vpack.c.bf16 %v393_v24, %v392_v23 }
  0x4f   :  { %1854 = vmatprep.subr.bf16.mxu0 %v1853_v34  ;;  %1882 = vmatprep.subr.bf16.mxu1 %v1881_v47 }
  0x52   :  { %1856 = vmatpush3.bf16.msra.mxu0 %v1853_v34  ;;  %1884 = vmatpush3.bf16.msra.mxu1 %v1881_v47 }
  0x53   :  { %1858 = vmatprep.subr.bf16.mxu0 %v1857_v40  ;;  %1886 = vmatprep.subr.bf16.mxu1 %v1885_v50 }
  0x56   :  { %1860 = vmatpush3.bf16.msra.mxu0 %v1857_v40  ;;  %1888 = vmatpush3.bf16.msra.mxu1 %v1885_v50  ;;  %v1265_v40 = vld [vmem:[%s2666_s4] ss:$0 sm:$0xff]  ;;  %s2298_s4 = smov 64  }
  0x57   :  { %1862 = vmatprep.subr.bf16.mxu0 %v1861_v46  ;;  %1890 = vmatprep.subr.bf16.mxu1 %v1889_v54 }
  0x5a   :  { %1864 = vmatpush3.bf16.msra.mxu0 %v1861_v46  ;;  %1892 = vmatpush3.bf16.msra.mxu1 %v1889_v54 }
  0x5b   :  { %1897 = vmatprep.subr.bf16.mxu0 %v2294_v53  ;;  %1894 = vmatprep.subr.bf16.mxu1 %v1893_v57 }
  0x5e   :  { %1896 = vmatpush3.bf16.msra.mxu1 %v1893_v57 }
  0x5f   :  { %1921 = vmatprep.subr.bf16.mxu1 %v2294_v53 }
  0xb8   :  { %v77_v60 = vpop.permute.xlu0 %76  ;;  %v83_v61 = vpop.permute.xlu1 %82 }
  0xb9   :  { %vm99_vm0 = vcmp.eq.s32.totalorder %v74_v59, %v77_v60  ;;  %vm101_vm1 = vcmp.eq.s32.totalorder %v74_v59, %v83_v61 }
  0xba   :  { %1497 = vmatprep.mubr.msk.f32.mxu0 %vm99_vm0, %v2295_v0 }
  0xbc   :  { %v80_v2 = vpop.permute.xlu0 %79  ;;  %v86_v3 = vpop.permute.xlu1 %85 }
  0xbd   :  { %vm100_vm2 = vcmp.eq.s32.totalorder %v74_v59, %v80_v2  ;;  %vm102_vm3 = vcmp.eq.s32.totalorder %v74_v59, %v86_v3 }
  0xbe   :  { %1498 = vmatmul.mubr.msk.f32.vlgmr.msra.gmra.mrb[0].mxu0 %vm100_vm2, %v2295_v0 }
  0xbf   :  { %1500 = vmatprep.mubr.msk.f32.mxu0 %vm101_vm1, %v2295_v0  ;;  %1899 = vmatpush3.bf16.msra.mxu0 %v2416_v1 }
  0xc0   :  { %v89_v7 = vpop.permute.xlu0 %88  ;;  %v92_v8 = vpop.permute.xlu1 %91  ;;  %1900 = vmatprep.subr.bf16.mxu0 %v2294_v53 }
  0xc1   :  { %vm103_vm4 = vcmp.eq.s32.totalorder %v74_v59, %v89_v7  ;;  %vm104_vm5 = vcmp.eq.s32.totalorder %v74_v59, %v92_v8 }
  0xc2   :  { %1501 = vmatmul.mubr.msk.f32.gmra.mrb[2].mxu0 %vm102_vm3, %v2295_v0 }
  0xc3   :  { %1503 = vmatprep.mubr.msk.f32.mxu0 %vm103_vm4, %v2295_v0  ;;  %1902 = vmatpush3.bf16.msra.mxu0 %v2419_v6 }
  0xc4   :  { %v95_v12 = vpop.permute.xlu0 %94  ;;  %1903 = vmatprep.subr.bf16.mxu0 %v2294_v53  ;;  %v98_v15 = vpop.permute.xlu1 %97 }
  0xc5   :  { %vm105_vm6 = vcmp.eq.s32.totalorder %v74_v59, %v95_v12  ;;  %vm106_vm7 = vcmp.eq.s32.totalorder %v74_v59, %v98_v15 }
  0xc6   :  { %1504 = vmatmul.mubr.msk.f32.gmra.mrb[4].mxu0 %vm104_vm5, %v2295_v0 }
  0xc7   :  { %1506 = vmatprep.mubr.msk.f32.mxu0 %vm105_vm6, %v2295_v0  ;;  %1905 = vmatpush3.bf16.msra.mxu0 %v2423_v11 }
  0xc8   :  { %1906 = vmatprep.subr.bf16.mxu0 %v2294_v53 }
  0xca   :  { %1507 = vmatmul.mubr.msk.f32.gmra.mrb[6].mxu0 %vm106_vm7, %v2295_v0 }
  0xcb   :  { %1908 = vmatpush3.bf16.msra.mxu0 %v2427_v16  ;;  %1585 = vmatprep.mubr.msk.f32.mxu0 %vm2296_vm8, %v2297_v29 }
  0xcc   :  { %1909 = vmatprep.subr.bf16.mxu0 %v2294_v53 }
  0xcf   :  { %1911 = vmatpush3.bf16.msra.mxu0 %v2431_v19 }
  0xd0   :  { %1912 = vmatprep.subr.bf16.mxu0 %v2294_v53 }
  0xd3   :  { %1914 = vmatpush3.bf16.msra.mxu0 %v2435_v22 }
  0xd4   :  { %1915 = vmatprep.subr.bf16.mxu0 %v2294_v53 }
  0xd7   :  { %1917 = vmatpush3.bf16.msra.mxu0 %v2439_v25 }
  0xd8   :  { %1918 = vmatprep.subr.bf16.mxu0 %v2294_v53 }
  0xdb   :  { %1920 = vmatpush3.bf16.msra.mxu0 %v2444_v28 }
  0xdc   :  { %1945 = vmatprep.subr.bf16.mxu0 %v2294_v53 }
  0xde   :  { %1586 = vmatmul.mubr.f32.vlgmr.msra.gmra.mrb[8].mxu0 %v2297_v29 }
  0xdf   :  { %1947 = vmatpush3.bf16.msra.mxu0 %v2416_v1  ;;  %1655 = vmatprep.mubr.msk.f32.mxu0 %vm2296_vm8, %v2297_v29 }
  0xe0   :  { %1948 = vmatprep.subr.bf16.mxu0 %v2294_v53 }
  0xe3   :  { %1950 = vmatpush3.bf16.msra.mxu0 %v2419_v6 }
  0xe4   :  { %1951 = vmatprep.subr.bf16.mxu0 %v2294_v53 }
  0xe7   :  { %1953 = vmatpush3.bf16.msra.mxu0 %v2423_v11 }
  0xe8   :  { %1954 = vmatprep.subr.bf16.mxu0 %v2294_v53 }
  0xeb   :  { %1956 = vmatpush3.bf16.msra.mxu0 %v2427_v16 }
  0xec   :  { %1957 = vmatprep.subr.bf16.mxu0 %v2294_v53 }
  0xef   :  { %1959 = vmatpush3.bf16.msra.mxu0 %v2431_v19 }
  0xf0   :  { %1960 = vmatprep.subr.bf16.mxu0 %v2294_v53 }
  0xf3   :  { %1962 = vmatpush3.bf16.msra.mxu0 %v2435_v22 }
  0xf4   :  { %1963 = vmatprep.subr.bf16.mxu0 %v2294_v53 }
  0xf7   :  { %1965 = vmatpush3.bf16.msra.mxu0 %v2439_v25 }
  0xf8   :  { %1966 = vmatprep.subr.bf16.mxu0 %v2294_v53 }
  0xfb   :  { %1968 = vmatpush3.bf16.msra.mxu0 %v2444_v28 }
  0xfc   :  { %1993 = vmatprep.subr.bf16.mxu0 %v2294_v53 }
 0x191   :  { %v1499_v30 = vpop.f32.mrb[0].mxu0 }
 0x192   :  { %v205_v31 = vpop.f32.mrb[1].mxu0 }
 0x193   :  { %1541 = vmatprep.mubr.f32.mxu1 %v205_v31 }
 0x194   :  { %1542 = vmatmul.mubr.f32.vlgmr.msra.gmra.mrb[0].mxu1 %v1499_v30 }
 0x195   :  { %v1502_v32 = vpop.f32.mrb[2].mxu0  ;;  %1923 = vmatpush3.bf16.msra.mxu1 %v2416_v1 }
 0x196   :  { %v215_v33 = vpop.f32.mrb[3].mxu0  ;;  %1924 = vmatprep.subr.bf16.mxu1 %v2294_v53 }
 0x197   :  { %1544 = vmatprep.mubr.f32.mxu1 %v215_v33 }
 0x198   :  { %1545 = vmatmul.mubr.f32.gmra.mrb[2].mxu1 %v1502_v32 }
 0x199   :  { %v1505_v34 = vpop.f32.mrb[4].mxu0  ;;  %1926 = vmatpush3.bf16.msra.mxu1 %v2419_v6 }
 0x19a   :  { %v225_v35 = vpop.f32.mrb[5].mxu0  ;;  %1927 = vmatprep.subr.bf16.mxu1 %v2294_v53 }
 0x19b   :  { %1547 = vmatprep.mubr.f32.mxu1 %v225_v35 }
 0x19c   :  { %1548 = vmatmul.mubr.f32.gmra.mrb[4].mxu1 %v1505_v34 }
 0x19d   :  { %v1508_v36 = vpop.f32.mrb[6].mxu0  ;;  %1929 = vmatpush3.bf16.msra.mxu1 %v2423_v11 }
 0x19e   :  { %v235_v37 = vpop.f32.mrb[7].mxu0  ;;  %1930 = vmatprep.subr.bf16.mxu1 %v2294_v53 }
 0x19f   :  { %1550 = vmatprep.mubr.f32.mxu1 %v235_v37 }
 0x1a0   :  { %1551 = vmatmul.mubr.f32.gmra.mrb[6].mxu1 %v1508_v36 }
 0x1a1   :  { %1932 = vmatpush3.bf16.msra.mxu1 %v2427_v16  ;;  %1620 = vmatprep.mubr.msk.f32.mxu1 %vm2296_vm8, %v2297_v29 }
 0x1a2   :  { %1933 = vmatprep.subr.bf16.mxu1 %v2294_v53 }
 0x1a5   :  { %1935 = vmatpush3.bf16.msra.mxu1 %v2431_v19 }
 0x1a6   :  { %1936 = vmatprep.subr.bf16.mxu1 %v2294_v53 }
 0x1a9   :  { %1938 = vmatpush3.bf16.msra.mxu1 %v2435_v22 }
 0x1aa   :  { %1939 = vmatprep.subr.bf16.mxu1 %v2294_v53 }
 0x1ad   :  { %1941 = vmatpush3.bf16.msra.mxu1 %v2439_v25 }
 0x1ae   :  { %1942 = vmatprep.subr.bf16.mxu1 %v2294_v53 }
 0x1b1   :  { %1944 = vmatpush3.bf16.msra.mxu1 %v2444_v28  ;;  %v463_v38 = vpop.f32.mrb[8].mxu0 }
 0x1b2   :  { %1969 = vmatprep.subr.bf16.mxu1 %v2294_v53  ;;  %v1587_v39 = vpop.f32.mrb[9].mxu0 }
 0x267   :  { %v1543_v41 = vpop.f32.mrb[0].mxu1 }
 0x268   :  { %v339_v42 = vadd.f32 %v1543_v41, %v1265_v40  ;;  %v333_v43 = vpop.f32.mrb[1].mxu1 }
 0x269   :  { %v334_v44 = vadd.f32 %v1265_v40, %v333_v43 }
 0x26b   :  { %v467_v45 = vadd.f32 %v463_v38, %v334_v44  ;;  %v1546_v46 = vpop.f32.mrb[2].mxu1 }
 0x26c   :  { %v2490_v47 = vadd.f32 %v1546_v46, %v1265_v40  ;;  %v343_v48 = vpop.f32.mrb[3].mxu1 }
 0x26d   :  { %2106 = vtanh.f32 %v467_v45  ;;  %v2492_v49 = vadd.f32 %v1265_v40, %v343_v48  ;;  %v1266_v60 = vmul.f32 -1.442695, %v467_v45 }
 0x26f   :  { %v1549_v50 = vpop.f32.mrb[4].mxu1  ;;  %2108 = vpow2.f32 %v1266_v60 }
 0x270   :  { %v2494_v51 = vadd.f32 %v1549_v50, %v1265_v40  ;;  %v353_v52 = vpop.f32.mrb[5].mxu1 }
 0x271   :  { %v2496_v54 = vadd.f32 %v1265_v40, %v353_v52 }
 0x273   :  { %v1552_v55 = vpop.f32.mrb[6].mxu1 }
 0x274   :  { %v2498_v56 = vadd.f32 %v1552_v55, %v1265_v40  ;;  %v363_v57 = vpop.f32.mrb[7].mxu1 }
 0x275   :  { %v2500_v58 = vadd.f32 %v1265_v40, %v363_v57 }
 0x277   :  { %v2107_v59 = vpop.eup %2106 }
 0x278   :  { %477 = vrot.lane.b32.xlu0 %v2107_v59, %s2298_s4 }
 0x279   :  { %v2109_v61 = vpop.eup %2108 }
 0x27a   :  { %v471_v62 = vadd.f32 1.0, %v2109_v61 }
 0x27c   :  { %2110 = vrcp.f32 %v471_v62 }
 0x286   :  { %v2111_v63 = vpop.eup %2110 }
 0x287   :  { %v475_v3 = vmul.f32 0.0, %v2111_v63 }
 0x2ea   :  { %v478_v0 = vpop.permute.xlu0 %477 }
 0x2eb   :  { %v480_v2 = vmul.f32 %v2111_v63, %v478_v0 }
 0x2ed   :  { %482 = vrot.lane.b32.xlu1 %v480_v2, %s2299_s25 }
 0x35f   :  { %v483_v4 = vpop.permute.xlu1 %482 }
 0x360   :  { %v485_v5 = vadd.f32 %v483_v4, %v475_v3 }
 0x362   :  { %2112 = vtanh.f32 %v485_v5 }
 0x36c   :  { %v2113_v7 = vpop.eup %2112 }
 0x36d   :  { %488 = vrot.lane.b32.xlu0 %v2113_v7, %s2298_s4 }
 0x3df   :  { %v489_v8 = vpop.permute.xlu0 %488 }
 0x3e0   :  { %v491_v9 = vmul.f32 %v2111_v63, %v489_v8 }
 0x3e2   :  { %493 = vrot.lane.b32.xlu1 %v491_v9, %s2299_s25 }
 0x454   :  { %v494_v10 = vpop.permute.xlu1 %493 }
 0x455   :  { %1621 = vmatmul.mubr.msk.f32.vlgmr.msra.gmra.mrb[8].mxu1 %vm496_vm9, %v494_v10 }
 0x456   :  { %1971 = vmatpush3.bf16.msra.mxu1 %v2416_v1  ;;  %1690 = vmatprep.mubr.msk.f32.mxu1 %vm2296_vm8, %v2297_v29 }
 0x457   :  { %1972 = vmatprep.subr.bf16.mxu1 %v2294_v53 }
 0x45a   :  { %1974 = vmatpush3.bf16.msra.mxu1 %v2419_v6 }
 0x45b   :  { %1975 = vmatprep.subr.bf16.mxu1 %v2294_v53 }
 0x45e   :  { %1977 = vmatpush3.bf16.msra.mxu1 %v2423_v11 }
 0x45f   :  { %1978 = vmatprep.subr.bf16.mxu1 %v2294_v53 }
 0x462   :  { %1980 = vmatpush3.bf16.msra.mxu1 %v2427_v16 }
 0x463   :  { %1981 = vmatprep.subr.bf16.mxu1 %v2294_v53 }
 0x466   :  { %1983 = vmatpush3.bf16.msra.mxu1 %v2431_v19 }
 0x467   :  { %1984 = vmatprep.subr.bf16.mxu1 %v2294_v53 }
 0x46a   :  { %1986 = vmatpush3.bf16.msra.mxu1 %v2435_v22 }
 0x46b   :  { %1987 = vmatprep.subr.bf16.mxu1 %v2294_v53 }
 0x46e   :  { %1989 = vmatpush3.bf16.msra.mxu1 %v2439_v25 }
 0x46f   :  { %1990 = vmatprep.subr.bf16.mxu1 %v2294_v53 }
 0x472   :  { %1992 = vmatpush3.bf16.msra.mxu1 %v2444_v28 }
 0x473   :  { %2017 = vmatprep.subr.bf16.mxu1 %v2294_v53 }
 0x528   :  { %v566_v12 = vpop.f32.mrb[8].mxu1 }
 0x529   :  { %v570_v13 = vadd.f32 %v566_v12, %v339_v42  ;;  %v1622_v14 = vpop.f32.mrb[9].mxu1 }
 0x52b   :  { %2114 = vtanh.f32 %v570_v13  ;;  %v1268_v17 = vmul.f32 -1.442695, %v570_v13 }
 0x52d   :  { %2116 = vpow2.f32 %v1268_v17 }
 0x535   :  { %v2115_v15 = vpop.eup %2114 }
 0x536   :  { %580 = vrot.lane.b32.xlu0 %v2115_v15, %s2298_s4 }
 0x537   :  { %v2117_v18 = vpop.eup %2116 }
 0x538   :  { %v574_v20 = vadd.f32 1.0, %v2117_v18 }
 0x53a   :  { %2118 = vrcp.f32 %v574_v20 }
 0x544   :  { %v2119_v21 = vpop.eup %2118 }
 0x545   :  { %v578_v26 = vmul.f32 %v2119_v21, %v485_v5 }
 0x5a8   :  { %v581_v23 = vpop.permute.xlu0 %580 }
 0x5a9   :  { %v583_v24 = vmul.f32 %v2119_v21, %v581_v23 }
 0x5ab   :  { %585 = vrot.lane.b32.xlu1 %v583_v24, %s2299_s25 }
 0x61d   :  { %v586_v27 = vpop.permute.xlu1 %585 }
 0x61e   :  { %v588_v30 = vadd.f32 %v586_v27, %v578_v26 }
 0x620   :  { %2120 = vtanh.f32 %v588_v30 }
 0x62a   :  { %v2121_v31 = vpop.eup %2120 }
 0x62b   :  { %591 = vrot.lane.b32.xlu0 %v2121_v31, %s2298_s4 }
 0x69d   :  { %v592_v32 = vpop.permute.xlu0 %591 }
 0x69e   :  { %v594_v33 = vmul.f32 %v2119_v21, %v592_v32 }
 0x6a0   :  { %596 = vrot.lane.b32.xlu1 %v594_v33, %s2299_s25 }
 0x712   :  { %v597_v34 = vpop.permute.xlu1 %596 }
 0x713   :  { %1656 = vmatmul.mubr.msk.f32.vlgmr.msra.gmra.mrb[10].mxu0 %vm496_vm9, %v597_v34 }
 0x714   :  { %1995 = vmatpush3.bf16.msra.mxu0 %v2416_v1  ;;  %1725 = vmatprep.mubr.msk.f32.mxu0 %vm2296_vm8, %v2297_v29 }
 0x715   :  { %1996 = vmatprep.subr.bf16.mxu0 %v2294_v53 }
 0x718   :  { %1998 = vmatpush3.bf16.msra.mxu0 %v2419_v6 }
 0x719   :  { %1999 = vmatprep.subr.bf16.mxu0 %v2294_v53 }
 0x71c   :  { %2001 = vmatpush3.bf16.msra.mxu0 %v2423_v11 }
 0x71d   :  { %2002 = vmatprep.subr.bf16.mxu0 %v2294_v53 }
 0x720   :  { %2004 = vmatpush3.bf16.msra.mxu0 %v2427_v16 }
 0x721   :  { %2005 = vmatprep.subr.bf16.mxu0 %v2294_v53 }
 0x724   :  { %2007 = vmatpush3.bf16.msra.mxu0 %v2431_v19 }
 0x725   :  { %2008 = vmatprep.subr.bf16.mxu0 %v2294_v53 }
 0x728   :  { %2010 = vmatpush3.bf16.msra.mxu0 %v2435_v22 }
 0x729   :  { %2011 = vmatprep.subr.bf16.mxu0 %v2294_v53 }
 0x72c   :  { %2013 = vmatpush3.bf16.msra.mxu0 %v2439_v25 }
 0x72d   :  { %2014 = vmatprep.subr.bf16.mxu0 %v2294_v53 }
 0x730   :  { %2016 = vmatpush3.bf16.msra.mxu0 %v2444_v28 }
 0x731   :  { %2041 = vmatprep.subr.bf16.mxu0 %v2294_v53 }
 0x7e6   :  { %v668_v35 = vpop.f32.mrb[10].mxu0 }
 0x7e7   :  { %v672_v36 = vadd.f32 %v668_v35, %v2492_v49  ;;  %v1657_v37 = vpop.f32.mrb[11].mxu0 }
 0x7e9   :  { %2122 = vtanh.f32 %v672_v36  ;;  %v1270_v39 = vmul.f32 -1.442695, %v672_v36 }
 0x7eb   :  { %2124 = vpow2.f32 %v1270_v39 }
 0x7f3   :  { %v2123_v38 = vpop.eup %2122 }
 0x7f4   :  { %682 = vrot.lane.b32.xlu0 %v2123_v38, %s2298_s4 }
 0x7f5   :  { %v2125_v40 = vpop.eup %2124 }
 0x7f6   :  { %v676_v41 = vadd.f32 1.0, %v2125_v40 }
 0x7f8   :  { %2126 = vrcp.f32 %v676_v41 }
 0x802   :  { %v2127_v42 = vpop.eup %2126 }
 0x803   :  { %v680_v45 = vmul.f32 %v2127_v42, %v588_v30 }
 0x866   :  { %v683_v43 = vpop.permute.xlu0 %682 }
 0x867   :  { %v685_v44 = vmul.f32 %v2127_v42, %v683_v43 }
 0x869   :  { %687 = vrot.lane.b32.xlu1 %v685_v44, %s2299_s25 }
 0x8db   :  { %v688_v46 = vpop.permute.xlu1 %687 }
 0x8dc   :  { %v690_v48 = vadd.f32 %v688_v46, %v680_v45 }
 0x8de   :  { %2128 = vtanh.f32 %v690_v48 }
 0x8e8   :  { %v2129_v49 = vpop.eup %2128 }
 0x8e9   :  { %693 = vrot.lane.b32.xlu0 %v2129_v49, %s2298_s4 }
 0x95b   :  { %v694_v50 = vpop.permute.xlu0 %693 }
 0x95c   :  { %v696_v52 = vmul.f32 %v2127_v42, %v694_v50 }
 0x95e   :  { %698 = vrot.lane.b32.xlu1 %v696_v52, %s2299_s25 }
 0x9d0   :  { %v699_v55 = vpop.permute.xlu1 %698 }
 0x9d1   :  { %1691 = vmatmul.mubr.msk.f32.vlgmr.msra.gmra.mrb[10].mxu1 %vm496_vm9, %v699_v55 }
 0x9d2   :  { %2019 = vmatpush3.bf16.msra.mxu1 %v2416_v1  ;;  %1760 = vmatprep.mubr.msk.f32.mxu1 %vm2296_vm8, %v2297_v29 }
 0x9d3   :  { %2020 = vmatprep.subr.bf16.mxu1 %v2294_v53 }
 0x9d6   :  { %2022 = vmatpush3.bf16.msra.mxu1 %v2419_v6 }
 0x9d7   :  { %2023 = vmatprep.subr.bf16.mxu1 %v2294_v53 }
 0x9da   :  { %2025 = vmatpush3.bf16.msra.mxu1 %v2423_v11 }
 0x9db   :  { %2026 = vmatprep.subr.bf16.mxu1 %v2294_v53 }
 0x9de   :  { %2028 = vmatpush3.bf16.msra.mxu1 %v2427_v16 }
 0x9df   :  { %2029 = vmatprep.subr.bf16.mxu1 %v2294_v53 }
 0x9e2   :  { %2031 = vmatpush3.bf16.msra.mxu1 %v2431_v19 }
 0x9e3   :  { %2032 = vmatprep.subr.bf16.mxu1 %v2294_v53 }
 0x9e6   :  { %2034 = vmatpush3.bf16.msra.mxu1 %v2435_v22 }
 0x9e7   :  { %2035 = vmatprep.subr.bf16.mxu1 %v2294_v53 }
 0x9ea   :  { %2037 = vmatpush3.bf16.msra.mxu1 %v2439_v25 }
 0x9eb   :  { %2038 = vmatprep.subr.bf16.mxu1 %v2294_v53 }
 0x9ee   :  { %2040 = vmatpush3.bf16.msra.mxu1 %v2444_v28 }
 0x9ef   :  { %2065 = vmatprep.subr.bf16.mxu1 %v2294_v53 }
 0xaa4   :  { %v770_v57 = vpop.f32.mrb[10].mxu1 }
 0xaa5   :  { %v774_v59 = vadd.f32 %v770_v57, %v2490_v47  ;;  %v1692_v60 = vpop.f32.mrb[11].mxu1 }
 0xaa7   :  { %2130 = vtanh.f32 %v774_v59  ;;  %v1272_v62 = vmul.f32 -1.442695, %v774_v59 }
 0xaa9   :  { %2132 = vpow2.f32 %v1272_v62 }
 0xab1   :  { %v2131_v61 = vpop.eup %2130 }
 0xab2   :  { %784 = vrot.lane.b32.xlu0 %v2131_v61, %s2298_s4 }
 0xab3   :  { %v2133_v63 = vpop.eup %2132 }
 0xab4   :  { %v778_v0 = vadd.f32 1.0, %v2133_v63 }
 0xab6   :  { %2134 = vrcp.f32 %v778_v0 }
 0xac0   :  { %v2135_v2 = vpop.eup %2134 }
 0xac1   :  { %v782_v5 = vmul.f32 %v2135_v2, %v690_v48 }
 0xb24   :  { %v785_v3 = vpop.permute.xlu0 %784 }
 0xb25   :  { %v787_v4 = vmul.f32 %v2135_v2, %v785_v3 }
 0xb27   :  { %789 = vrot.lane.b32.xlu1 %v787_v4, %s2299_s25 }
 0xb99   :  { %v790_v7 = vpop.permute.xlu1 %789 }
 0xb9a   :  { %v792_v8 = vadd.f32 %v790_v7, %v782_v5 }
 0xb9c   :  { %2136 = vtanh.f32 %v792_v8 }
 0xba6   :  { %v2137_v47 = vpop.eup %2136 }
 0xba7   :  { %795 = vrot.lane.b32.xlu0 %v2137_v47, %s2298_s4 }
 0xc19   :  { %v796_v9 = vpop.permute.xlu0 %795 }
 0xc1a   :  { %v798_v10 = vmul.f32 %v2135_v2, %v796_v9 }
 0xc1c   :  { %800 = vrot.lane.b32.xlu1 %v798_v10, %s2299_s25 }
 0xc8e   :  { %v801_v12 = vpop.permute.xlu1 %800 }
 0xc8f   :  { %1726 = vmatmul.mubr.msk.f32.vlgmr.msra.gmra.mrb[12].mxu0 %vm496_vm9, %v801_v12 }
 0xc90   :  { %2043 = vmatpush3.bf16.msra.mxu0 %v2416_v1  ;;  %1795 = vmatprep.mubr.msk.f32.mxu0 %vm2296_vm8, %v2297_v29 }
 0xc91   :  { %2044 = vmatprep.subr.bf16.mxu0 %v2294_v53 }
 0xc94   :  { %2046 = vmatpush3.bf16.msra.mxu0 %v2419_v6 }
 0xc95   :  { %2047 = vmatprep.subr.bf16.mxu0 %v2294_v53 }
 0xc98   :  { %2049 = vmatpush3.bf16.msra.mxu0 %v2423_v11 }
 0xc99   :  { %2050 = vmatprep.subr.bf16.mxu0 %v2294_v53 }
 0xc9c   :  { %2052 = vmatpush3.bf16.msra.mxu0 %v2427_v16 }
 0xc9d   :  { %2053 = vmatprep.subr.bf16.mxu0 %v2294_v53 }
 0xca0   :  { %2055 = vmatpush3.bf16.msra.mxu0 %v2431_v19 }
 0xca1   :  { %2056 = vmatprep.subr.bf16.mxu0 %v2294_v53 }
 0xca4   :  { %2058 = vmatpush3.bf16.msra.mxu0 %v2435_v22 }
 0xca5   :  { %2059 = vmatprep.subr.bf16.mxu0 %v2294_v53 }
 0xca8   :  { %2061 = vmatpush3.bf16.msra.mxu0 %v2439_v25 }
 0xca9   :  { %2062 = vmatprep.subr.bf16.mxu0 %v2294_v53 }
 0xcac   :  { %2064 = vmatpush3.bf16.msra.mxu0 %v2444_v28 }
 0xd62   :  { %v872_v13 = vpop.f32.mrb[12].mxu0 }
 0xd63   :  { %v876_v14 = vadd.f32 %v872_v13, %v2496_v54  ;;  %v1727_v15 = vpop.f32.mrb[13].mxu0 }
 0xd65   :  { %2138 = vtanh.f32 %v876_v14  ;;  %v1274_v18 = vmul.f32 -1.442695, %v876_v14 }
 0xd67   :  { %2140 = vpow2.f32 %v1274_v18 }
 0xd6f   :  { %v2139_v17 = vpop.eup %2138 }
 0xd70   :  { %886 = vrot.lane.b32.xlu0 %v2139_v17, %s2298_s4 }
 0xd71   :  { %v2141_v20 = vpop.eup %2140 }
 0xd72   :  { %v880_v21 = vadd.f32 1.0, %v2141_v20 }
 0xd74   :  { %2142 = vrcp.f32 %v880_v21 }
 0xd7e   :  { %v2143_v23 = vpop.eup %2142 }
 0xd7f   :  { %v884_v27 = vmul.f32 %v2143_v23, %v792_v8 }
 0xde2   :  { %v887_v24 = vpop.permute.xlu0 %886 }
 0xde3   :  { %v889_v26 = vmul.f32 %v2143_v23, %v887_v24 }
 0xde5   :  { %891 = vrot.lane.b32.xlu1 %v889_v26, %s2299_s25 }
 0xe57   :  { %v892_v30 = vpop.permute.xlu1 %891 }
 0xe58   :  { %v894_v31 = vadd.f32 %v892_v30, %v884_v27 }
 0xe5a   :  { %2144 = vtanh.f32 %v894_v31 }
 0xe64   :  { %v2145_v54 = vpop.eup %2144 }
 0xe65   :  { %897 = vrot.lane.b32.xlu0 %v2145_v54, %s2298_s4 }
 0xed7   :  { %v898_v32 = vpop.permute.xlu0 %897 }
 0xed8   :  { %v900_v33 = vmul.f32 %v2143_v23, %v898_v32 }
 0xeda   :  { %902 = vrot.lane.b32.xlu1 %v900_v33, %s2299_s25 }
 0xf4c   :  { %v903_v34 = vpop.permute.xlu1 %902 }
 0xf4d   :  { %1761 = vmatmul.mubr.msk.f32.vlgmr.msra.gmra.mrb[12].mxu1 %vm496_vm9, %v903_v34 }
 0xf4e   :  { %2067 = vmatpush3.bf16.msra.mxu1 %v2416_v1  ;;  %1830 = vmatprep.mubr.msk.f32.mxu1 %vm2296_vm8, %v2297_v29 }
 0xf4f   :  { %2068 = vmatprep.subr.bf16.mxu1 %v2294_v53 }
 0xf52   :  { %2070 = vmatpush3.bf16.msra.mxu1 %v2419_v6 }
 0xf53   :  { %2071 = vmatprep.subr.bf16.mxu1 %v2294_v53 }
 0xf56   :  { %2073 = vmatpush3.bf16.msra.mxu1 %v2423_v11 }
 0xf57   :  { %2074 = vmatprep.subr.bf16.mxu1 %v2294_v53 }
 0xf5a   :  { %2076 = vmatpush3.bf16.msra.mxu1 %v2427_v16 }
 0xf5b   :  { %2077 = vmatprep.subr.bf16.mxu1 %v2294_v53 }
 0xf5e   :  { %2079 = vmatpush3.bf16.msra.mxu1 %v2431_v19 }
 0xf5f   :  { %2080 = vmatprep.subr.bf16.mxu1 %v2294_v53 }
 0xf62   :  { %2082 = vmatpush3.bf16.msra.mxu1 %v2435_v22 }
 0xf63   :  { %2083 = vmatprep.subr.bf16.mxu1 %v2294_v53 }
 0xf66   :  { %2085 = vmatpush3.bf16.msra.mxu1 %v2439_v25 }
 0xf67   :  { %2086 = vmatprep.subr.bf16.mxu1 %v2294_v53 }
 0xf6a   :  { %2088 = vmatpush3.bf16.msra.mxu1 %v2444_v28 }
0x1020   :  { %v974_v1 = vpop.f32.mrb[12].mxu1 }
0x1021   :  { %v978_v6 = vadd.f32 %v974_v1, %v2494_v51  ;;  %v1762_v11 = vpop.f32.mrb[13].mxu1 }
0x1023   :  { %2146 = vtanh.f32 %v978_v6  ;;  %v1276_v19 = vmul.f32 -1.442695, %v978_v6 }
0x1025   :  { %2148 = vpow2.f32 %v1276_v19 }
0x102d   :  { %v2147_v16 = vpop.eup %2146 }
0x102e   :  { %988 = vrot.lane.b32.xlu0 %v2147_v16, %s2298_s4 }
0x102f   :  { %v2149_v29 = vpop.eup %2148 }
0x1030   :  { %v982_v22 = vadd.f32 1.0, %v2149_v29 }
0x1032   :  { %2150 = vrcp.f32 %v982_v22 }
0x103c   :  { %v2151_v35 = vpop.eup %2150 }
0x103d   :  { %v986_v53 = vmul.f32 %v2151_v35, %v894_v31 }
0x10a0   :  { %v989_v36 = vpop.permute.xlu0 %988 }
0x10a1   :  { %v991_v25 = vmul.f32 %v2151_v35, %v989_v36 }
0x10a3   :  { %993 = vrot.lane.b32.xlu1 %v991_v25, %s2299_s25 }
0x1115   :  { %v994_v28 = vpop.permute.xlu1 %993 }
0x1116   :  { %v996_v37 = vadd.f32 %v994_v28, %v986_v53 }
0x1118   :  { %2152 = vtanh.f32 %v996_v37 }
0x1122   :  { %v2153_v51 = vpop.eup %2152 }
0x1123   :  { %999 = vrot.lane.b32.xlu0 %v2153_v51, %s2298_s4 }
0x1195   :  { %v1000_v38 = vpop.permute.xlu0 %999 }
0x1196   :  { %v1002_v39 = vmul.f32 %v2151_v35, %v1000_v38 }
0x1198   :  { %1004 = vrot.lane.b32.xlu1 %v1002_v39, %s2299_s25 }
0x120a   :  { %v1005_v40 = vpop.permute.xlu1 %1004 }
0x120b   :  { %1796 = vmatmul.mubr.msk.f32.vlgmr.msra.gmra.mrb[14].mxu0 %vm496_vm9, %v1005_v40 }
0x12de   :  { %v1076_v41 = vpop.f32.mrb[14].mxu0 }
0x12df   :  { %v1080_v42 = vadd.f32 %v1076_v41, %v2500_v58  ;;  %v1797_v43 = vpop.f32.mrb[15].mxu0 }
0x12e1   :  { %2154 = vtanh.f32 %v1080_v42  ;;  %v1278_v45 = vmul.f32 -1.442695, %v1080_v42 }
0x12e3   :  { %2156 = vpow2.f32 %v1278_v45 }
0x12eb   :  { %v2155_v44 = vpop.eup %2154 }
0x12ec   :  { %1090 = vrot.lane.b32.xlu0 %v2155_v44, %s2298_s4 }
0x12ed   :  { %v2157_v46 = vpop.eup %2156 }
0x12ee   :  { %v1084_v48 = vadd.f32 1.0, %v2157_v46 }
0x12f0   :  { %2158 = vrcp.f32 %v1084_v48 }
0x12fa   :  { %v2159_v49 = vpop.eup %2158 }
0x12fb   :  { %v1088_v55 = vmul.f32 %v2159_v49, %v996_v37 }
0x135e   :  { %v1091_v50 = vpop.permute.xlu0 %1090 }
0x135f   :  { %v1093_v52 = vmul.f32 %v2159_v49, %v1091_v50 }
0x1361   :  { %1095 = vrot.lane.b32.xlu1 %v1093_v52, %s2299_s25 }
0x13d3   :  { %v1096_v57 = vpop.permute.xlu1 %1095 }
0x13d4   :  { %v1098_v59 = vadd.f32 %v1096_v57, %v1088_v55 }
0x13d6   :  { %2160 = vtanh.f32 %v1098_v59 }
0x13e0   :  { %v2161_v58 = vpop.eup %2160 }
0x13e1   :  { %1101 = vrot.lane.b32.xlu0 %v2161_v58, %s2298_s4 }
0x1453   :  { %v1102_v60 = vpop.permute.xlu0 %1101 }
0x1454   :  { %v1104_v61 = vmul.f32 %v2159_v49, %v1102_v60 }
0x1456   :  { %1106 = vrot.lane.b32.xlu1 %v1104_v61, %s2299_s25 }
0x14c8   :  { %v1107_v62 = vpop.permute.xlu1 %1106 }
0x14c9   :  { %1831 = vmatmul.mubr.msk.f32.vlgmr.msra.gmra.mrb[14].mxu1 %vm496_vm9, %v1107_v62 }
0x159c   :  { %v1178_v63 = vpop.f32.mrb[14].mxu1 }
0x159d   :  { %v1182_v0 = vadd.f32 %v1178_v63, %v2498_v56  ;;  %v1832_v2 = vpop.f32.mrb[15].mxu1 }
0x159f   :  { %2162 = vtanh.f32 %v1182_v0  ;;  %v1280_v4 = vmul.f32 -1.442695, %v1182_v0 }
0x15a1   :  { %2164 = vpow2.f32 %v1280_v4 }
0x15a9   :  { %v2163_v3 = vpop.eup %2162 }
0x15aa   :  { %1192 = vrot.lane.b32.xlu0 %v2163_v3, %s2298_s4 }
0x15ab   :  { %v2165_v5 = vpop.eup %2164 }
0x15ac   :  { %v1186_v7 = vadd.f32 1.0, %v2165_v5 }
0x15ae   :  { %2166 = vrcp.f32 %v1186_v7 }
0x15b8   :  { %v2167_v8 = vpop.eup %2166 }
0x15b9   :  { %v1190_v10 = vmul.f32 %v2167_v8, %v1098_v59 }
0x161c   :  { %v1193_v47 = vpop.permute.xlu0 %1192 }
0x161d   :  { %v1195_v9 = vmul.f32 %v2167_v8, %v1193_v47 }
0x161f   :  { %1197 = vrot.lane.b32.xlu1 %v1195_v9, %s2299_s25 }
0x1691   :  { %v1198_v12 = vpop.permute.xlu1 %1197 }
0x1692   :  { %v1200_v13 = vadd.f32 %v1198_v12, %v1190_v10 }
0x1694   :  { %2168 = vtanh.f32 %v1200_v13 }
0x169e   :  { %v2169_v56 = vpop.eup %2168 }
0x169f   :  { %1203 = vrot.lane.b32.xlu0 %v2169_v56, %s2298_s4 }
0x16a3   :  { %1215 = vrot.lane.b32.xlu0 %v1200_v13, %s2300_s26 }
0x1711   :  { %v1204_v14 = vpop.permute.xlu0 %1203 }
0x1712   :  { %v1206_v15 = vmul.f32 %v2167_v8, %v1204_v14 }
0x1714   :  { %1208 = vrot.lane.b32.xlu1 %v1206_v15, %s2299_s25 }
0x1715   :  { %v1216_v17 = vpop.permute.xlu0 %1215 }
0x1716   :  { %1218 = vst.msk [vmem:[#allocation10] sm:$0x3] %vm1212_vm10, %v1216_v17 }
0x1717   :  { %2247 = shalt.err (!%p2244_p0)
}
0x1718   :  { %s2248_s8 = scalar_lea.hbm %s2668_s6, 32 }
0x1719   :  { %p2249_p1 = scmp.ne.s32.totalorder %s2668_s6, %s2248_s8  ;;  %p2252_p2 = scmp.lt.u32.totalorder %s2248_s8, %s2668_s6 }
0x171b   :  { %p2254_p3 = pnand %p2252_p2, %p2249_p1 }
0x171d   :  { %2257 = shalt.err (!%p2254_p3)
}
0x171e   :  { %1238 = dma.vmem_to_hbm [thread:$0]  %s1236_s28, 32, %s2668_s6, [#allocation11]  }
0x171f   :  { %s2302_s15 = smov [#allocation9]  }
0x1720   :  { %s1225_s16 = sshll.u32 %s2302_s15, 4  ;;  %s1226_s16 = int_to_ptr.vmem [resolvable:$true] %s1225_s16 }
0x1721   :  { %s2258_s3 = scalar_lea.vmem %s1226_s16, 32  ;;  %p2263_p5 = scmp.lt.s32.totalorder %s1226_s16, %s1226_s16 }
0x1722   :  { %p2259_p4 = scmp.ne.s32.totalorder %s1226_s16, %s2258_s3  ;;  %p2264_p6 = scmp.lt.s32.totalorder %s2258_s3, %s2258_s3 }
0x1724   :  { %p2265_p7 = por %p2264_p6, %p2263_p5 }
0x1726   :  { %p2266_p8 = pnand %p2265_p7, %p2259_p4 }
0x1786   :  { %v1209_v18 = vpop.permute.xlu1 %1208 }
0x1787   :  { %v1211_v20 = vsel %vm496_vm9, %v1209_v18, 0.0 }
0x1788   :  { %1213 = vst.msk [vmem:[#allocation9] sm:$0x3] %vm1212_vm10, %v1211_v20 }
0x1789   :  { %2269 = shalt.err (!%p2266_p8)
}
0x178a   :  { %s2270_s17 = scalar_lea.hbm %s2667_s5, 32 }
0x178b   :  { %p2271_p9 = scmp.ne.s32.totalorder %s2667_s5, %s2270_s17  ;;  %p2274_p10 = scmp.lt.u32.totalorder %s2270_s17, %s2667_s5 }
0x178d   :  { %p2276_p11 = pnand %p2274_p10, %p2271_p9 }
0x178f   :  { %2279 = shalt.err (!%p2276_p11)
}
0x1790   :  { %1228 = dma.vmem_to_hbm [thread:$0]  %s1226_s16, 32, %s2667_s5, [#allocation5]  }
0x1791   :  { %2284 = dma.done.wait [#allocation5], 32  }
0x1792   :  { %2285 = vsyncadd [#allocation5], 4294967264 }
0x1793   :  { %2286 = dma.done.wait [#allocation11], 32  }
0x1794   :  { %2287 = vsyncadd [#allocation11], 4294967264 }
0x1795   :  { %1245 = vsyncpa [#allocation4], 1 }
0x1796   :  { %1246 = vsyncpa [#allocation7], 1 }
0x1797   :  { %1247 = vsyncpa [#allocation5], 1 }
0x1798   :  { %1248 = vsyncpa [#allocation11], 1 }

</bundles_post_ra>
